<compile_context>
chip_gen: v6e
topology: v6e:2x2x1
jax: 0.10.0
libtpu: 0.0.40
codegen_flags: <defaults>
</compile_context>

<pallas_src>
import functools

import numpy as np
import jax
import jax.numpy as jnp
from jax.experimental import pallas as pl
from jax.experimental.pallas import tpu as pltpu


def _round_up(x, m):
    return (x + m - 1) // m * m


def bengio_kernel(x_ref, w_ref, b_ref, o_ref, *, tn):
    """x_ref: VMEM (B, Kp)  bf16  -- flattened embeddings (resident across grid)
       w_ref: VMEM (Kp, TN) bf16  -- one vocab tile of the linear weight (streamed)
       b_ref: VMEM (1, Vp)  f32   -- full padded bias (resident, sliced per tile)
       o_ref: VMEM (B, TN)        -- tanh(x @ w + b) for this vocab tile
    """
    n = pl.program_id(0)
    logits = jnp.dot(x_ref[...], w_ref[...], preferred_element_type=jnp.float32)
    start = pl.multiple_of(n * tn, 128)          # tn % 128 == 0 -> lane-aligned slice
    bias = b_ref[:, pl.ds(start, tn)]
    o_ref[...] = jnp.tanh(logits + bias).astype(o_ref.dtype)


def bengio_prepare_params(w_pt, b, *, tn=2048, stream_dtype=jnp.bfloat16):
    """One-time weight prep (hoisted out of the per-call path).

    w_pt: (vocab, K) f32   -- nn.Linear weight in PyTorch (out, in) layout
    b:    (vocab,)   f32   -- nn.Linear bias
    Returns (w_prepped, b_prepped):
      w_prepped: (Kp, Vp) stream_dtype  -- transposed, cast, zero-padded
      b_prepped: (1, Vp)  f32           -- zero-padded
    Padding with zeros is mathematically exact; padded columns are sliced off.
    """
    vocab, k = w_pt.shape
    assert b.shape == (vocab,)
    assert tn % 128 == 0, "vocab tile must be lane-aligned"

    kp = _round_up(k, 16)                        # sublane-friendly K (bf16 packs 16 rows)
    vp = _round_up(vocab, tn)

    w = w_pt.T.astype(stream_dtype)              # (K, V): kernel computes x @ w
    if kp != k or vp != vocab:
        w = jnp.pad(w, ((0, kp - k), (0, vp - vocab)))
    b2 = b.reshape(1, vocab).astype(jnp.float32)
    if vp != vocab:
        b2 = jnp.pad(b2, ((0, 0), (0, vp - vocab)))
    return w, b2


def bengio_forward(ids, emb_table, w_prepped, b_prepped, *, vocab,
                   tn=2048, stream_dtype=jnp.bfloat16, out_dtype=jnp.float32):
    """Forward pass: tanh(flatten(E[ids]) @ W^T + b), vocab-tiled on TPU.

    ids:        (B, window) int32 token ids
    emb_table:  (vocab, dim) f32              -- nn.Embedding weight
    w_prepped:  (Kp, Vp) bf16                 -- from bengio_prepare_params
    b_prepped:  (1, Vp)  f32                  -- from bengio_prepare_params
    returns     (B, vocab) out_dtype
    """
    batch, window = ids.shape
    _, dim = emb_table.shape
    k = window * dim
    kp, vp = w_prepped.shape
    assert vp % tn == 0 and b_prepped.shape == (1, vp)

    # ---- wrapper-side embedding gather + flatten (tiny: B*K values) --------
    x = jnp.take(emb_table, ids, axis=0).reshape(batch, k).astype(stream_dtype)
    if kp != k:
        x = jnp.pad(x, ((0, 0), (0, kp - k)))    # zero K-padding contributes 0 to the dot

    out = pl.pallas_call(
        functools.partial(bengio_kernel, tn=tn),
        out_shape=jax.ShapeDtypeStruct((batch, vp), out_dtype),
        grid_spec=pltpu.PrefetchScalarGridSpec(
            num_scalar_prefetch=0,
            grid=(vp // tn,),
            in_specs=[
                # activations: small, same block every step (stays resident)
                pl.BlockSpec((batch, kp), lambda n: (0, 0)),
                # weights: streamed vocab tile, double-buffered by the pipeline.
                # (If DMA is still exposed on v5e, add pipeline_mode=pl.Buffered(3).)
                pl.BlockSpec((kp, tn), lambda n: (0, n)),
                # bias: full padded row, resident (constant index_map), sliced in-kernel
                pl.BlockSpec((1, vp), lambda n: (0, 0)),
            ],
            out_specs=pl.BlockSpec((batch, tn), lambda n: (0, n)),
        ),
        compiler_params=pltpu.CompilerParams(
            # Independent vocab tiles; shards across the two TensorCores on
            # v7x only (v5e/v6e are single-TC chips, where this is a no-op).
            dimension_semantics=("parallel",),
        ),
    )(x, w_prepped, b_prepped)

    return out[:, :vocab]


if __name__ == "__main__":
    # Small demo shapes consistent with the module defaults (dim=50, window=3);
    # vocab shrunk from 33279 to 4000 (non-multiple of the tile, to exercise
    # the padding path), batch=8 (multiple of 8 -> unmasked f32 stores).
    BATCH, WINDOW, DIM, VOCAB, TN = 8, 3, 50, 4000, 2048

    key = jax.random.PRNGKey(0)
    k_ids, k_emb, k_w, k_b = jax.random.split(key, 4)

    ids = jax.random.randint(k_ids, (BATCH, WINDOW), 0, VOCAB, dtype=jnp.int32)
    emb_table = jax.random.normal(k_emb, (VOCAB, DIM), dtype=jnp.float32) * 0.1
    # PyTorch nn.Linear weight layout: (out_features, in_features) = (V, window*dim)
    w_pt = jax.random.normal(k_w, (VOCAB, WINDOW * DIM), dtype=jnp.float32) * 0.05
    b = jax.random.normal(k_b, (VOCAB,), dtype=jnp.float32) * 0.01

    # One-time weight prep (transpose / cast / pad hoisted out of the hot path).
    w_prepped, b_prepped = bengio_prepare_params(w_pt, b, tn=TN)

    fwd = jax.jit(
        functools.partial(bengio_forward, vocab=VOCAB, tn=TN)
    )
    out = jax.block_until_ready(fwd(ids, emb_table, w_prepped, b_prepped))

    # Pure-JAX reference of the PyTorch forward (Embedding->Flatten->Linear->Tanh),
    # using the same bf16 cast of the streamed operands with f32 accumulation
    # (deliberate precision tradeoff; see header note).
    x_f32 = (
        emb_table[ids]
        .reshape(BATCH, WINDOW * DIM)
        .astype(jnp.bfloat16)
        .astype(jnp.float32)
    )
    w_f32 = w_pt.astype(jnp.bfloat16).astype(jnp.float32)
    ref = jnp.tanh(x_f32 @ w_f32.T + b.reshape(1, VOCAB))

    np.testing.assert_allclose(np.asarray(out), np.asarray(ref), rtol=2e-3, atol=2e-3)

    # TODO(synk): CrossEntropyLoss is defined on the module but not used in
    # forward(); it is intentionally not implemented here.
    print("KERNEL_OK")
</pallas_src>

<mosaic_0001>
module attributes {stable_mosaic.version = 11 : i64} {
  func.func @bengio_kernel(%arg0: i32, %arg1: memref<8x160xbf16, #tpu.memory_space<vmem>>, %arg2: memref<160x2048xbf16, #tpu.memory_space<vmem>>, %arg3: memref<1x4096xf32, #tpu.memory_space<vmem>>, %arg4: memref<8x2048xf32, #tpu.memory_space<vmem>>) attributes {dimension_semantics = [#tpu.dimension_semantics<parallel>], iteration_bounds = array<i64: 2>, scalar_prefetch = 0 : i64, scratch_operands = 0 : i64, tpu.core_type = #tpu.core_type<tc>, window_params = [{pipeline_mode = #tpu.pipeline_mode<synchronous>, transform_indices = @transform_0, window_bounds = array<i64: 8, 160>}, {transform_indices = @transform_1, window_bounds = array<i64: 160, 2048>}, {pipeline_mode = #tpu.pipeline_mode<synchronous>, transform_indices = @transform_2, window_bounds = array<i64: 1, 4096>}, {transform_indices = @transform_3, window_bounds = array<i64: 8, 2048>}]} {
    %c0 = arith.constant 0 : index
    %c0_0 = arith.constant 0 : index
    %0 = vector.load %arg1[%c0, %c0_0] : memref<8x160xbf16, #tpu.memory_space<vmem>>, vector<8x160xbf16>
    %c0_1 = arith.constant 0 : index
    %c0_2 = arith.constant 0 : index
    %1 = vector.load %arg2[%c0_1, %c0_2] : memref<160x2048xbf16, #tpu.memory_space<vmem>>, vector<160x2048xbf16>
    %cst = arith.constant dense<0.000000e+00> : vector<8x2048xf32>
    %2 = tpu.matmul %0, %1, %cst {dimension_numbers = #tpu.dot_dimension_numbers<[1], [0], [0], [1], [0, 0, 1, 1], [], []>} : vector<8x160xbf16>, vector<160x2048xbf16>, vector<8x2048xf32> -> vector<8x2048xf32>
    %c2048_i32 = arith.constant 2048 : i32
    %3 = arith.muli %arg0, %c2048_i32 : i32
    %4 = tpu.assume_multiple %3, 128 : i32
    %c0_3 = arith.constant 0 : index
    %5 = arith.index_cast %4 : i32 to index
    %6 = vector.load %arg3[%c0_3, %5] : memref<1x4096xf32, #tpu.memory_space<vmem>>, vector<1x2048xf32>
    %7 = vector.broadcast %6 : vector<1x2048xf32> to vector<8x2048xf32>
    %8 = arith.addf %2, %7 : vector<8x2048xf32>
    %9 = math.tanh %8 : vector<8x2048xf32>
    %c0_4 = arith.constant 0 : index
    %c0_5 = arith.constant 0 : index
    %10 = vector.load %arg4[%c0_4, %c0_5] : memref<8x2048xf32, #tpu.memory_space<vmem>>, vector<8x2048xf32>
    tpu.vector_store %arg4[%c0_4, %c0_5], %9 {strides = array<i32>} : memref<8x2048xf32, #tpu.memory_space<vmem>>, vector<8x2048xf32>,
    return
  }
  func.func @transform_0(%arg0: i32) -> (i32, i32) {
    %c0_i32 = arith.constant 0 : i32
    %c0_i32_0 = arith.constant 0 : i32
    %c0_i32_1 = arith.constant 0 : i32
    return %c0_i32, %c0_i32_0 : i32, i32
  }
  func.func @transform_1(%arg0: i32) -> (i32, i32) {
    %c0_i32 = arith.constant 0 : i32
    %c0_i32_0 = arith.constant 0 : i32
    return %c0_i32, %arg0 : i32, i32
  }
  func.func @transform_2(%arg0: i32) -> (i32, i32) {
    %c0_i32 = arith.constant 0 : i32
    %c0_i32_0 = arith.constant 0 : i32
    %c0_i32_1 = arith.constant 0 : i32
    return %c0_i32, %c0_i32_0 : i32, i32
  }
  func.func @transform_3(%arg0: i32) -> (i32, i32) {
    %c0_i32 = arith.constant 0 : i32
    %c0_i32_0 = arith.constant 0 : i32
    return %c0_i32, %arg0 : i32, i32
  }
}

</mosaic_0001>

<bundles_post_ra>
// kernel: bengio_forward.1
= control target key start
LH: loop header
LB: loop body
LE: loop exit
PB: predicated region body
PF: predicated region fallthrough
CT: control target
= control target key end

     0   :  { %8 = vsyncpa [#allocation4], 0  ;;  %s3041_s0 = inlined_call_operand.vmem [shape: bf16[8,160], index: 0, kind: input, shape index: {}]   ;;  %s3042_s1 = inlined_call_operand.vmem [shape: bf16[160,4096], index: 1, kind: input, shape index: {}]   ;;  %s3043_s2 = inlined_call_operand.vmem [shape: f32[1,4096], index: 2, kind: input, shape index: {}]   ;;  %s3044_s3 = inlined_call_operand.hbm [shape: f32[8,4096], index: 3, kind: output, shape index: {}]  }
   0x1   :  { %10 = vsyncpa [#allocation4 + $0x1], 0  ;;  %s2353_s12 = smov 0   ;;  %s2355_s13 = smov 0  }
   0x2   :  { %s2357_s14 = smov 0   ;;  %s2359_s15 = smov 0  }
   0x3 LB: > { %s2009_s16 = sadd.s32 4294967295, %s2330_s15   ;;  %s2010_s17 = sadd.s32 4294967294, %s2330_s15   ;;  %s2330_s15 = sphi %s2359_s15, %s3050_s15   ;;  %s2326_s14 = sphi %s2357_s14, %s3049_s14   ;;  %s2322_s13 = sphi %s2355_s13, %s3048_s13   ;;  %s2318_s12 = sphi %s2353_s12, %s3047_s12  }
   0x4   : > { %s2376_s18 = sadd.s32 1, %s2330_s15   ;;  %s44_s19 = sadd.s32 1, %s2326_s14 }
   0x5   : > { %s41_s20 = ssub.s32 %s2330_s15, %s2376_s18  ;;  %p51_p0 = scmp.ne.s32.totalorder %s2326_s14, %s2322_s13 }
   0x6   : > { %p42_p1 = scmp.eq.s32.totalorder %s41_s20, 0  ;;  %p52_p2 = scmp.eq.s32.totalorder %s2330_s15, 0 }
   0x7   : > { %p102_p3 = scmp.eq.s32.totalorder %s2009_s16, 1  ;;  %p107_p4 = scmp.ne.s32.totalorder %s2322_s13, %s2318_s12 }
   0x8   : > { %s2389_s21 = scalar_select %p42_p1, %s2326_s14, %s44_s19  }
   0x9   : > { %p53_p5 = por %p52_p2, %p51_p0  ;;  %p2391_p6 = por %p102_p3, %p51_p0 }
   0xa   : > { %p108_p7 = scmp.eq.s32.totalorder %s2010_s17, 1  ;;  %p2012_p9 = scmp.ge.s32.totalorder %s2330_s15, 2 }
   0xc   : > { %p2395_p8 = por %p108_p7, %p107_p4  ;;  %130 = sbr.rel (%p2012_p9) target bundleno = 102 (0x66), region = 24 }
  0x11   : > { %133 = sbr.rel (!%p53_p5) target bundleno = 102 (0x66), region = 28  ;;  %s135_s24 = sand.u32 (%p53_p5), 1, %s2326_s14  }
  0x12   : > { %s2193_s25 = sshll.u32 (%p53_p5), %s2330_s15, 6  ;;  %s2195_s26 = smul.u32 (%p53_p5), 1280, %s135_s24 }
  0x13   : > { %s2407_s29 = scalar_lea.vmem (%p53_p5), %s3042_s1, %s2193_s25 }
  0x14   : > { %v153_v0 = vld [vmem:[%s2407_s29] sm:$0xff] (%p53_p5)  ;;  %v155_v1 = vld [vmem:[%s2407_s29 + $0x8] sm:$0xff] (%p53_p5)  ;;  %v157_v2 = vld [vmem:[%s2407_s29 + $0x10] sm:$0xff] (%p53_p5)  ;;  %s2415_s30 = scalar_lea.vmem (%p53_p5), [#allocation2], %s2195_s26 }
  0x15   : > { %v159_v3 = vld [vmem:[%s2407_s29 + $0x18] sm:$0xff] (%p53_p5)  ;;  %v161_v4 = vld [vmem:[%s2407_s29 + $0x20] sm:$0xff] (%p53_p5)  ;;  %v163_v5 = vld [vmem:[%s2407_s29 + $0x28] sm:$0xff] (%p53_p5)  ;;  %154 = vst [vmem:[%s2415_s30] sm:$0xff] (%p53_p5), %v153_v0 }
  0x16   : > { %156 = vst [vmem:[%s2415_s30 + $0x8] sm:$0xff] %v155_v1  ;;  %158 = vst [vmem:[%s2415_s30 + $0x10] sm:$0xff] %v157_v2  ;;  %v165_v6 = vld [vmem:[%s2407_s29 + $0x30] sm:$0xff]  ;;  %v167_v7 = vld [vmem:[%s2407_s29 + $0x38] sm:$0xff] }
  0x17   : > { %160 = vst [vmem:[%s2415_s30 + $0x18] sm:$0xff] %v159_v3  ;;  %162 = vst [vmem:[%s2415_s30 + $0x20] sm:$0xff] %v161_v4  ;;  %v169_v8 = vld [vmem:[%s2407_s29 + $0x80] sm:$0xff]  ;;  %v171_v9 = vld [vmem:[%s2407_s29 + $0x88] sm:$0xff] }
  0x18   : > { %164 = vst [vmem:[%s2415_s30 + $0x28] sm:$0xff] %v163_v5  ;;  %166 = vst [vmem:[%s2415_s30 + $0x30] sm:$0xff] %v165_v6  ;;  %v173_v10 = vld [vmem:[%s2407_s29 + $0x90] sm:$0xff]  ;;  %v175_v11 = vld [vmem:[%s2407_s29 + $0x98] sm:$0xff] }
  0x19   : > { %168 = vst [vmem:[%s2415_s30 + $0x38] sm:$0xff] %v167_v7  ;;  %170 = vst [vmem:[%s2415_s30 + $0x40] sm:$0xff] %v169_v8  ;;  %v177_v12 = vld [vmem:[%s2407_s29 + $0xa0] sm:$0xff]  ;;  %v179_v13 = vld [vmem:[%s2407_s29 + $0xa8] sm:$0xff] }
  0x1a   : > { %172 = vst [vmem:[%s2415_s30 + $0x48] sm:$0xff] %v171_v9  ;;  %174 = vst [vmem:[%s2415_s30 + $0x50] sm:$0xff] %v173_v10  ;;  %v181_v14 = vld [vmem:[%s2407_s29 + $0xb0] sm:$0xff]  ;;  %v183_v15 = vld [vmem:[%s2407_s29 + $0xb8] sm:$0xff] }
  0x1b   : > { %176 = vst [vmem:[%s2415_s30 + $0x58] sm:$0xff] %v175_v11  ;;  %178 = vst [vmem:[%s2415_s30 + $0x60] sm:$0xff] %v177_v12  ;;  %v185_v16 = vld [vmem:[%s2407_s29 + $0x100] sm:$0xff]  ;;  %v187_v17 = vld [vmem:[%s2407_s29 + $0x108] sm:$0xff] }
  0x1c   : > { %180 = vst [vmem:[%s2415_s30 + $0x68] sm:$0xff] %v179_v13  ;;  %182 = vst [vmem:[%s2415_s30 + $0x70] sm:$0xff] %v181_v14  ;;  %v189_v18 = vld [vmem:[%s2407_s29 + $0x110] sm:$0xff]  ;;  %v191_v19 = vld [vmem:[%s2407_s29 + $0x118] sm:$0xff] }
  0x1d   : > { %184 = vst [vmem:[%s2415_s30 + $0x78] sm:$0xff] %v183_v15  ;;  %186 = vst [vmem:[%s2415_s30 + $0x80] sm:$0xff] %v185_v16  ;;  %v193_v20 = vld [vmem:[%s2407_s29 + $0x120] sm:$0xff]  ;;  %v195_v21 = vld [vmem:[%s2407_s29 + $0x128] sm:$0xff] }
  0x1e   : > { %188 = vst [vmem:[%s2415_s30 + $0x88] sm:$0xff] %v187_v17  ;;  %190 = vst [vmem:[%s2415_s30 + $0x90] sm:$0xff] %v189_v18  ;;  %v197_v22 = vld [vmem:[%s2407_s29 + $0x130] sm:$0xff]  ;;  %v199_v23 = vld [vmem:[%s2407_s29 + $0x138] sm:$0xff] }
  0x1f   : > { %192 = vst [vmem:[%s2415_s30 + $0x98] sm:$0xff] %v191_v19  ;;  %194 = vst [vmem:[%s2415_s30 + $0xa0] sm:$0xff] %v193_v20  ;;  %v201_v24 = vld [vmem:[%s2407_s29 + $0x180] sm:$0xff]  ;;  %v203_v25 = vld [vmem:[%s2407_s29 + $0x188] sm:$0xff] }
  0x20   : > { %196 = vst [vmem:[%s2415_s30 + $0xa8] sm:$0xff] %v195_v21  ;;  %198 = vst [vmem:[%s2415_s30 + $0xb0] sm:$0xff] %v197_v22  ;;  %v205_v26 = vld [vmem:[%s2407_s29 + $0x190] sm:$0xff]  ;;  %v207_v27 = vld [vmem:[%s2407_s29 + $0x198] sm:$0xff] }
  0x21   : > { %200 = vst [vmem:[%s2415_s30 + $0xb8] sm:$0xff] %v199_v23  ;;  %202 = vst [vmem:[%s2415_s30 + $0xc0] sm:$0xff] %v201_v24  ;;  %v209_v28 = vld [vmem:[%s2407_s29 + $0x1a0] sm:$0xff]  ;;  %v211_v29 = vld [vmem:[%s2407_s29 + $0x1a8] sm:$0xff] }
  0x22   : > { %204 = vst [vmem:[%s2415_s30 + $0xc8] sm:$0xff] %v203_v25  ;;  %206 = vst [vmem:[%s2415_s30 + $0xd0] sm:$0xff] %v205_v26  ;;  %v213_v30 = vld [vmem:[%s2407_s29 + $0x1b0] sm:$0xff]  ;;  %v215_v31 = vld [vmem:[%s2407_s29 + $0x1b8] sm:$0xff] }
  0x23   : > { %208 = vst [vmem:[%s2415_s30 + $0xd8] sm:$0xff] %v207_v27  ;;  %210 = vst [vmem:[%s2415_s30 + $0xe0] sm:$0xff] %v209_v28  ;;  %v217_v32 = vld [vmem:[%s2407_s29 + $0x200] sm:$0xff]  ;;  %v219_v33 = vld [vmem:[%s2407_s29 + $0x208] sm:$0xff] }
  0x24   : > { %212 = vst [vmem:[%s2415_s30 + $0xe8] sm:$0xff] %v211_v29  ;;  %214 = vst [vmem:[%s2415_s30 + $0xf0] sm:$0xff] %v213_v30  ;;  %v221_v34 = vld [vmem:[%s2407_s29 + $0x210] sm:$0xff]  ;;  %v223_v35 = vld [vmem:[%s2407_s29 + $0x218] sm:$0xff] }
  0x25   : > { %216 = vst [vmem:[%s2415_s30 + $0xf8] sm:$0xff] %v215_v31  ;;  %218 = vst [vmem:[%s2415_s30 + $0x100] sm:$0xff] %v217_v32  ;;  %v225_v36 = vld [vmem:[%s2407_s29 + $0x220] sm:$0xff]  ;;  %v227_v37 = vld [vmem:[%s2407_s29 + $0x228] sm:$0xff] }
  0x26   : > { %220 = vst [vmem:[%s2415_s30 + $0x108] sm:$0xff] %v219_v33  ;;  %222 = vst [vmem:[%s2415_s30 + $0x110] sm:$0xff] %v221_v34  ;;  %v229_v38 = vld [vmem:[%s2407_s29 + $0x230] sm:$0xff]  ;;  %v231_v39 = vld [vmem:[%s2407_s29 + $0x238] sm:$0xff] }
  0x27   : > { %224 = vst [vmem:[%s2415_s30 + $0x118] sm:$0xff] %v223_v35  ;;  %226 = vst [vmem:[%s2415_s30 + $0x120] sm:$0xff] %v225_v36  ;;  %v233_v40 = vld [vmem:[%s2407_s29 + $0x280] sm:$0xff]  ;;  %v235_v41 = vld [vmem:[%s2407_s29 + $0x288] sm:$0xff] }
  0x28   : > { %228 = vst [vmem:[%s2415_s30 + $0x128] sm:$0xff] %v227_v37  ;;  %230 = vst [vmem:[%s2415_s30 + $0x130] sm:$0xff] %v229_v38  ;;  %v237_v42 = vld [vmem:[%s2407_s29 + $0x290] sm:$0xff]  ;;  %v239_v43 = vld [vmem:[%s2407_s29 + $0x298] sm:$0xff] }
  0x29   : > { %232 = vst [vmem:[%s2415_s30 + $0x138] sm:$0xff] %v231_v39  ;;  %234 = vst [vmem:[%s2415_s30 + $0x140] sm:$0xff] %v233_v40  ;;  %v241_v44 = vld [vmem:[%s2407_s29 + $0x2a0] sm:$0xff]  ;;  %v243_v45 = vld [vmem:[%s2407_s29 + $0x2a8] sm:$0xff] }
  0x2a   : > { %236 = vst [vmem:[%s2415_s30 + $0x148] sm:$0xff] %v235_v41  ;;  %238 = vst [vmem:[%s2415_s30 + $0x150] sm:$0xff] %v237_v42  ;;  %v245_v46 = vld [vmem:[%s2407_s29 + $0x2b0] sm:$0xff]  ;;  %v247_v47 = vld [vmem:[%s2407_s29 + $0x2b8] sm:$0xff] }
  0x2b   : > { %240 = vst [vmem:[%s2415_s30 + $0x158] sm:$0xff] %v239_v43  ;;  %242 = vst [vmem:[%s2415_s30 + $0x160] sm:$0xff] %v241_v44  ;;  %v249_v48 = vld [vmem:[%s2407_s29 + $0x300] sm:$0xff]  ;;  %v251_v49 = vld [vmem:[%s2407_s29 + $0x308] sm:$0xff] }
  0x2c   : > { %244 = vst [vmem:[%s2415_s30 + $0x168] sm:$0xff] %v243_v45  ;;  %246 = vst [vmem:[%s2415_s30 + $0x170] sm:$0xff] %v245_v46  ;;  %v253_v50 = vld [vmem:[%s2407_s29 + $0x310] sm:$0xff]  ;;  %v255_v51 = vld [vmem:[%s2407_s29 + $0x318] sm:$0xff] }
  0x2d   : > { %248 = vst [vmem:[%s2415_s30 + $0x178] sm:$0xff] %v247_v47  ;;  %250 = vst [vmem:[%s2415_s30 + $0x180] sm:$0xff] %v249_v48  ;;  %v257_v52 = vld [vmem:[%s2407_s29 + $0x320] sm:$0xff]  ;;  %v259_v53 = vld [vmem:[%s2407_s29 + $0x328] sm:$0xff] }
  0x2e   : > { %252 = vst [vmem:[%s2415_s30 + $0x188] sm:$0xff] %v251_v49  ;;  %254 = vst [vmem:[%s2415_s30 + $0x190] sm:$0xff] %v253_v50  ;;  %v261_v54 = vld [vmem:[%s2407_s29 + $0x330] sm:$0xff]  ;;  %v263_v55 = vld [vmem:[%s2407_s29 + $0x338] sm:$0xff] }
  0x2f   : > { %256 = vst [vmem:[%s2415_s30 + $0x198] sm:$0xff] %v255_v51  ;;  %258 = vst [vmem:[%s2415_s30 + $0x1a0] sm:$0xff] %v257_v52  ;;  %v265_v56 = vld [vmem:[%s2407_s29 + $0x380] sm:$0xff]  ;;  %v267_v57 = vld [vmem:[%s2407_s29 + $0x388] sm:$0xff] }
  0x30   : > { %260 = vst [vmem:[%s2415_s30 + $0x1a8] sm:$0xff] %v259_v53  ;;  %262 = vst [vmem:[%s2415_s30 + $0x1b0] sm:$0xff] %v261_v54  ;;  %v269_v58 = vld [vmem:[%s2407_s29 + $0x390] sm:$0xff]  ;;  %v271_v59 = vld [vmem:[%s2407_s29 + $0x398] sm:$0xff] }
  0x31   : > { %264 = vst [vmem:[%s2415_s30 + $0x1b8] sm:$0xff] %v263_v55  ;;  %266 = vst [vmem:[%s2415_s30 + $0x1c0] sm:$0xff] %v265_v56  ;;  %v273_v60 = vld [vmem:[%s2407_s29 + $0x3a0] sm:$0xff]  ;;  %v275_v61 = vld [vmem:[%s2407_s29 + $0x3a8] sm:$0xff] }
  0x32   : > { %268 = vst [vmem:[%s2415_s30 + $0x1c8] sm:$0xff] %v267_v57  ;;  %270 = vst [vmem:[%s2415_s30 + $0x1d0] sm:$0xff] %v269_v58  ;;  %v277_v62 = vld [vmem:[%s2407_s29 + $0x3b0] sm:$0xff]  ;;  %v279_v63 = vld [vmem:[%s2407_s29 + $0x3b8] sm:$0xff] }
  0x33   : > { %272 = vst [vmem:[%s2415_s30 + $0x1d8] sm:$0xff] %v271_v59  ;;  %274 = vst [vmem:[%s2415_s30 + $0x1e0] sm:$0xff] %v273_v60  ;;  %v281_v0 = vld [vmem:[%s2407_s29 + $0x400] sm:$0xff]  ;;  %v283_v1 = vld [vmem:[%s2407_s29 + $0x408] sm:$0xff] }
  0x34   : > { %276 = vst [vmem:[%s2415_s30 + $0x1e8] sm:$0xff] %v275_v61  ;;  %278 = vst [vmem:[%s2415_s30 + $0x1f0] sm:$0xff] %v277_v62  ;;  %v285_v2 = vld [vmem:[%s2407_s29 + $0x410] sm:$0xff]  ;;  %v287_v3 = vld [vmem:[%s2407_s29 + $0x418] sm:$0xff] }
  0x35   : > { %280 = vst [vmem:[%s2415_s30 + $0x1f8] sm:$0xff] %v279_v63  ;;  %282 = vst [vmem:[%s2415_s30 + $0x200] sm:$0xff] %v281_v0  ;;  %v289_v4 = vld [vmem:[%s2407_s29 + $0x420] sm:$0xff]  ;;  %v291_v5 = vld [vmem:[%s2407_s29 + $0x428] sm:$0xff] }
  0x36   : > { %284 = vst [vmem:[%s2415_s30 + $0x208] sm:$0xff] %v283_v1  ;;  %286 = vst [vmem:[%s2415_s30 + $0x210] sm:$0xff] %v285_v2  ;;  %v293_v6 = vld [vmem:[%s2407_s29 + $0x430] sm:$0xff]  ;;  %v295_v7 = vld [vmem:[%s2407_s29 + $0x438] sm:$0xff] }
  0x37   : > { %288 = vst [vmem:[%s2415_s30 + $0x218] sm:$0xff] %v287_v3  ;;  %290 = vst [vmem:[%s2415_s30 + $0x220] sm:$0xff] %v289_v4  ;;  %v297_v8 = vld [vmem:[%s2407_s29 + $0x480] sm:$0xff]  ;;  %v299_v9 = vld [vmem:[%s2407_s29 + $0x488] sm:$0xff] }
  0x38   : > { %292 = vst [vmem:[%s2415_s30 + $0x228] sm:$0xff] %v291_v5  ;;  %294 = vst [vmem:[%s2415_s30 + $0x230] sm:$0xff] %v293_v6  ;;  %v301_v10 = vld [vmem:[%s2407_s29 + $0x490] sm:$0xff]  ;;  %v303_v11 = vld [vmem:[%s2407_s29 + $0x498] sm:$0xff] }
  0x39   : > { %296 = vst [vmem:[%s2415_s30 + $0x238] sm:$0xff] %v295_v7  ;;  %298 = vst [vmem:[%s2415_s30 + $0x240] sm:$0xff] %v297_v8  ;;  %v305_v12 = vld [vmem:[%s2407_s29 + $0x4a0] sm:$0xff]  ;;  %v307_v13 = vld [vmem:[%s2407_s29 + $0x4a8] sm:$0xff] }
  0x3a   : > { %300 = vst [vmem:[%s2415_s30 + $0x248] sm:$0xff] %v299_v9  ;;  %302 = vst [vmem:[%s2415_s30 + $0x250] sm:$0xff] %v301_v10  ;;  %v309_v14 = vld [vmem:[%s2407_s29 + $0x4b0] sm:$0xff]  ;;  %v311_v15 = vld [vmem:[%s2407_s29 + $0x4b8] sm:$0xff] }
  0x3b   : > { %304 = vst [vmem:[%s2415_s30 + $0x258] sm:$0xff] %v303_v11  ;;  %306 = vst [vmem:[%s2415_s30 + $0x260] sm:$0xff] %v305_v12  ;;  %v313_v16 = vld [vmem:[%s2407_s29 + $0x500] sm:$0xff]  ;;  %v315_v17 = vld [vmem:[%s2407_s29 + $0x508] sm:$0xff] }
  0x3c   : > { %308 = vst [vmem:[%s2415_s30 + $0x268] sm:$0xff] %v307_v13  ;;  %310 = vst [vmem:[%s2415_s30 + $0x270] sm:$0xff] %v309_v14  ;;  %v317_v18 = vld [vmem:[%s2407_s29 + $0x510] sm:$0xff]  ;;  %v319_v19 = vld [vmem:[%s2407_s29 + $0x518] sm:$0xff] }
  0x3d   : > { %312 = vst [vmem:[%s2415_s30 + $0x278] sm:$0xff] %v311_v15  ;;  %314 = vst [vmem:[%s2415_s30 + $0x280] sm:$0xff] %v313_v16  ;;  %v321_v20 = vld [vmem:[%s2407_s29 + $0x520] sm:$0xff]  ;;  %v323_v21 = vld [vmem:[%s2407_s29 + $0x528] sm:$0xff] }
  0x3e   : > { %316 = vst [vmem:[%s2415_s30 + $0x288] sm:$0xff] %v315_v17  ;;  %318 = vst [vmem:[%s2415_s30 + $0x290] sm:$0xff] %v317_v18  ;;  %v325_v22 = vld [vmem:[%s2407_s29 + $0x530] sm:$0xff]  ;;  %v327_v23 = vld [vmem:[%s2407_s29 + $0x538] sm:$0xff] }
  0x3f   : > { %320 = vst [vmem:[%s2415_s30 + $0x298] sm:$0xff] %v319_v19  ;;  %322 = vst [vmem:[%s2415_s30 + $0x2a0] sm:$0xff] %v321_v20  ;;  %v329_v24 = vld [vmem:[%s2407_s29 + $0x580] sm:$0xff]  ;;  %v331_v25 = vld [vmem:[%s2407_s29 + $0x588] sm:$0xff] }
  0x40   : > { %324 = vst [vmem:[%s2415_s30 + $0x2a8] sm:$0xff] %v323_v21  ;;  %326 = vst [vmem:[%s2415_s30 + $0x2b0] sm:$0xff] %v325_v22  ;;  %v333_v26 = vld [vmem:[%s2407_s29 + $0x590] sm:$0xff]  ;;  %v335_v27 = vld [vmem:[%s2407_s29 + $0x598] sm:$0xff] }
  0x41   : > { %328 = vst [vmem:[%s2415_s30 + $0x2b8] sm:$0xff] %v327_v23  ;;  %330 = vst [vmem:[%s2415_s30 + $0x2c0] sm:$0xff] %v329_v24  ;;  %v337_v28 = vld [vmem:[%s2407_s29 + $0x5a0] sm:$0xff]  ;;  %v339_v29 = vld [vmem:[%s2407_s29 + $0x5a8] sm:$0xff] }
  0x42   : > { %332 = vst [vmem:[%s2415_s30 + $0x2c8] sm:$0xff] %v331_v25  ;;  %334 = vst [vmem:[%s2415_s30 + $0x2d0] sm:$0xff] %v333_v26  ;;  %v341_v30 = vld [vmem:[%s2407_s29 + $0x5b0] sm:$0xff]  ;;  %v343_v31 = vld [vmem:[%s2407_s29 + $0x5b8] sm:$0xff] }
  0x43   : > { %336 = vst [vmem:[%s2415_s30 + $0x2d8] sm:$0xff] %v335_v27  ;;  %338 = vst [vmem:[%s2415_s30 + $0x2e0] sm:$0xff] %v337_v28  ;;  %v345_v32 = vld [vmem:[%s2407_s29 + $0x600] sm:$0xff]  ;;  %v347_v33 = vld [vmem:[%s2407_s29 + $0x608] sm:$0xff] }
  0x44   : > { %340 = vst [vmem:[%s2415_s30 + $0x2e8] sm:$0xff] %v339_v29  ;;  %342 = vst [vmem:[%s2415_s30 + $0x2f0] sm:$0xff] %v341_v30  ;;  %v349_v34 = vld [vmem:[%s2407_s29 + $0x610] sm:$0xff]  ;;  %v351_v35 = vld [vmem:[%s2407_s29 + $0x618] sm:$0xff] }
  0x45   : > { %344 = vst [vmem:[%s2415_s30 + $0x2f8] sm:$0xff] %v343_v31  ;;  %346 = vst [vmem:[%s2415_s30 + $0x300] sm:$0xff] %v345_v32  ;;  %v353_v36 = vld [vmem:[%s2407_s29 + $0x620] sm:$0xff]  ;;  %v355_v37 = vld [vmem:[%s2407_s29 + $0x628] sm:$0xff] }
  0x46   : > { %348 = vst [vmem:[%s2415_s30 + $0x308] sm:$0xff] %v347_v33  ;;  %350 = vst [vmem:[%s2415_s30 + $0x310] sm:$0xff] %v349_v34  ;;  %v357_v38 = vld [vmem:[%s2407_s29 + $0x630] sm:$0xff]  ;;  %v359_v39 = vld [vmem:[%s2407_s29 + $0x638] sm:$0xff] }
  0x47   : > { %352 = vst [vmem:[%s2415_s30 + $0x318] sm:$0xff] %v351_v35  ;;  %354 = vst [vmem:[%s2415_s30 + $0x320] sm:$0xff] %v353_v36  ;;  %v361_v40 = vld [vmem:[%s2407_s29 + $0x680] sm:$0xff]  ;;  %v363_v41 = vld [vmem:[%s2407_s29 + $0x688] sm:$0xff] }
  0x48   : > { %356 = vst [vmem:[%s2415_s30 + $0x328] sm:$0xff] %v355_v37  ;;  %358 = vst [vmem:[%s2415_s30 + $0x330] sm:$0xff] %v357_v38  ;;  %v365_v42 = vld [vmem:[%s2407_s29 + $0x690] sm:$0xff]  ;;  %v367_v43 = vld [vmem:[%s2407_s29 + $0x698] sm:$0xff] }
  0x49   : > { %360 = vst [vmem:[%s2415_s30 + $0x338] sm:$0xff] %v359_v39  ;;  %362 = vst [vmem:[%s2415_s30 + $0x340] sm:$0xff] %v361_v40  ;;  %v369_v44 = vld [vmem:[%s2407_s29 + $0x6a0] sm:$0xff]  ;;  %v371_v45 = vld [vmem:[%s2407_s29 + $0x6a8] sm:$0xff] }
  0x4a   : > { %364 = vst [vmem:[%s2415_s30 + $0x348] sm:$0xff] %v363_v41  ;;  %366 = vst [vmem:[%s2415_s30 + $0x350] sm:$0xff] %v365_v42  ;;  %v373_v46 = vld [vmem:[%s2407_s29 + $0x6b0] sm:$0xff]  ;;  %v375_v47 = vld [vmem:[%s2407_s29 + $0x6b8] sm:$0xff] }
  0x4b   : > { %368 = vst [vmem:[%s2415_s30 + $0x358] sm:$0xff] %v367_v43  ;;  %370 = vst [vmem:[%s2415_s30 + $0x360] sm:$0xff] %v369_v44  ;;  %v377_v48 = vld [vmem:[%s2407_s29 + $0x700] sm:$0xff]  ;;  %v379_v49 = vld [vmem:[%s2407_s29 + $0x708] sm:$0xff] }
  0x4c   : > { %372 = vst [vmem:[%s2415_s30 + $0x368] sm:$0xff] %v371_v45  ;;  %374 = vst [vmem:[%s2415_s30 + $0x370] sm:$0xff] %v373_v46  ;;  %v381_v50 = vld [vmem:[%s2407_s29 + $0x710] sm:$0xff]  ;;  %v383_v51 = vld [vmem:[%s2407_s29 + $0x718] sm:$0xff] }
  0x4d   : > { %376 = vst [vmem:[%s2415_s30 + $0x378] sm:$0xff] %v375_v47  ;;  %378 = vst [vmem:[%s2415_s30 + $0x380] sm:$0xff] %v377_v48  ;;  %v385_v52 = vld [vmem:[%s2407_s29 + $0x720] sm:$0xff]  ;;  %v387_v53 = vld [vmem:[%s2407_s29 + $0x728] sm:$0xff] }
  0x4e   : > { %380 = vst [vmem:[%s2415_s30 + $0x388] sm:$0xff] %v379_v49  ;;  %382 = vst [vmem:[%s2415_s30 + $0x390] sm:$0xff] %v381_v50  ;;  %v389_v54 = vld [vmem:[%s2407_s29 + $0x730] sm:$0xff]  ;;  %v391_v55 = vld [vmem:[%s2407_s29 + $0x738] sm:$0xff] }
  0x4f   : > { %384 = vst [vmem:[%s2415_s30 + $0x398] sm:$0xff] %v383_v51  ;;  %386 = vst [vmem:[%s2415_s30 + $0x3a0] sm:$0xff] %v385_v52  ;;  %v393_v56 = vld [vmem:[%s2407_s29 + $0x780] sm:$0xff]  ;;  %v395_v57 = vld [vmem:[%s2407_s29 + $0x788] sm:$0xff] }
  0x50   : > { %388 = vst [vmem:[%s2415_s30 + $0x3a8] sm:$0xff] %v387_v53  ;;  %390 = vst [vmem:[%s2415_s30 + $0x3b0] sm:$0xff] %v389_v54  ;;  %v397_v58 = vld [vmem:[%s2407_s29 + $0x790] sm:$0xff]  ;;  %v399_v59 = vld [vmem:[%s2407_s29 + $0x798] sm:$0xff] }
  0x51   : > { %392 = vst [vmem:[%s2415_s30 + $0x3b8] sm:$0xff] %v391_v55  ;;  %394 = vst [vmem:[%s2415_s30 + $0x3c0] sm:$0xff] %v393_v56  ;;  %v401_v60 = vld [vmem:[%s2407_s29 + $0x7a0] sm:$0xff]  ;;  %v403_v61 = vld [vmem:[%s2407_s29 + $0x7a8] sm:$0xff] }
  0x52   : > { %396 = vst [vmem:[%s2415_s30 + $0x3c8] sm:$0xff] %v395_v57  ;;  %398 = vst [vmem:[%s2415_s30 + $0x3d0] sm:$0xff] %v397_v58  ;;  %v405_v62 = vld [vmem:[%s2407_s29 + $0x7b0] sm:$0xff]  ;;  %v407_v63 = vld [vmem:[%s2407_s29 + $0x7b8] sm:$0xff] }
  0x53   : > { %400 = vst [vmem:[%s2415_s30 + $0x3d8] sm:$0xff] %v399_v59  ;;  %402 = vst [vmem:[%s2415_s30 + $0x3e0] sm:$0xff] %v401_v60  ;;  %v409_v0 = vld [vmem:[%s2407_s29 + $0x800] sm:$0xff]  ;;  %v411_v1 = vld [vmem:[%s2407_s29 + $0x808] sm:$0xff] }
  0x54   : > { %404 = vst [vmem:[%s2415_s30 + $0x3e8] sm:$0xff] %v403_v61  ;;  %406 = vst [vmem:[%s2415_s30 + $0x3f0] sm:$0xff] %v405_v62  ;;  %v413_v2 = vld [vmem:[%s2407_s29 + $0x810] sm:$0xff]  ;;  %v415_v3 = vld [vmem:[%s2407_s29 + $0x818] sm:$0xff] }
  0x55   : > { %408 = vst [vmem:[%s2415_s30 + $0x3f8] sm:$0xff] %v407_v63  ;;  %410 = vst [vmem:[%s2415_s30 + $0x400] sm:$0xff] %v409_v0  ;;  %v417_v4 = vld [vmem:[%s2407_s29 + $0x820] sm:$0xff]  ;;  %v419_v5 = vld [vmem:[%s2407_s29 + $0x828] sm:$0xff] }
  0x56   : > { %412 = vst [vmem:[%s2415_s30 + $0x408] sm:$0xff] %v411_v1  ;;  %414 = vst [vmem:[%s2415_s30 + $0x410] sm:$0xff] %v413_v2  ;;  %v421_v6 = vld [vmem:[%s2407_s29 + $0x830] sm:$0xff]  ;;  %v423_v7 = vld [vmem:[%s2407_s29 + $0x838] sm:$0xff] }
  0x57   : > { %416 = vst [vmem:[%s2415_s30 + $0x418] sm:$0xff] %v415_v3  ;;  %418 = vst [vmem:[%s2415_s30 + $0x420] sm:$0xff] %v417_v4  ;;  %v425_v8 = vld [vmem:[%s2407_s29 + $0x880] sm:$0xff]  ;;  %v427_v9 = vld [vmem:[%s2407_s29 + $0x888] sm:$0xff] }
  0x58   : > { %420 = vst [vmem:[%s2415_s30 + $0x428] sm:$0xff] %v419_v5  ;;  %422 = vst [vmem:[%s2415_s30 + $0x430] sm:$0xff] %v421_v6  ;;  %v429_v10 = vld [vmem:[%s2407_s29 + $0x890] sm:$0xff]  ;;  %v431_v11 = vld [vmem:[%s2407_s29 + $0x898] sm:$0xff] }
  0x59   : > { %424 = vst [vmem:[%s2415_s30 + $0x438] sm:$0xff] %v423_v7  ;;  %426 = vst [vmem:[%s2415_s30 + $0x440] sm:$0xff] %v425_v8  ;;  %v433_v12 = vld [vmem:[%s2407_s29 + $0x8a0] sm:$0xff]  ;;  %v435_v13 = vld [vmem:[%s2407_s29 + $0x8a8] sm:$0xff] }
  0x5a   : > { %428 = vst [vmem:[%s2415_s30 + $0x448] sm:$0xff] %v427_v9  ;;  %430 = vst [vmem:[%s2415_s30 + $0x450] sm:$0xff] %v429_v10  ;;  %v437_v14 = vld [vmem:[%s2407_s29 + $0x8b0] sm:$0xff]  ;;  %v439_v15 = vld [vmem:[%s2407_s29 + $0x8b8] sm:$0xff] }
  0x5b   : > { %432 = vst [vmem:[%s2415_s30 + $0x458] sm:$0xff] %v431_v11  ;;  %434 = vst [vmem:[%s2415_s30 + $0x460] sm:$0xff] %v433_v12  ;;  %v441_v16 = vld [vmem:[%s2407_s29 + $0x900] sm:$0xff]  ;;  %v443_v17 = vld [vmem:[%s2407_s29 + $0x908] sm:$0xff] }
  0x5c   : > { %436 = vst [vmem:[%s2415_s30 + $0x468] sm:$0xff] %v435_v13  ;;  %438 = vst [vmem:[%s2415_s30 + $0x470] sm:$0xff] %v437_v14  ;;  %v445_v18 = vld [vmem:[%s2407_s29 + $0x910] sm:$0xff]  ;;  %v447_v19 = vld [vmem:[%s2407_s29 + $0x918] sm:$0xff] }
  0x5d   : > { %440 = vst [vmem:[%s2415_s30 + $0x478] sm:$0xff] %v439_v15  ;;  %442 = vst [vmem:[%s2415_s30 + $0x480] sm:$0xff] %v441_v16  ;;  %v449_v20 = vld [vmem:[%s2407_s29 + $0x920] sm:$0xff]  ;;  %v451_v21 = vld [vmem:[%s2407_s29 + $0x928] sm:$0xff] }
  0x5e   : > { %444 = vst [vmem:[%s2415_s30 + $0x488] sm:$0xff] %v443_v17  ;;  %446 = vst [vmem:[%s2415_s30 + $0x490] sm:$0xff] %v445_v18  ;;  %v453_v22 = vld [vmem:[%s2407_s29 + $0x930] sm:$0xff]  ;;  %v455_v23 = vld [vmem:[%s2407_s29 + $0x938] sm:$0xff] }
  0x5f   : > { %448 = vst [vmem:[%s2415_s30 + $0x498] sm:$0xff] %v447_v19  ;;  %450 = vst [vmem:[%s2415_s30 + $0x4a0] sm:$0xff] %v449_v20  ;;  %v457_v24 = vld [vmem:[%s2407_s29 + $0x980] sm:$0xff]  ;;  %v459_v25 = vld [vmem:[%s2407_s29 + $0x988] sm:$0xff] }
  0x60   : > { %452 = vst [vmem:[%s2415_s30 + $0x4a8] sm:$0xff] %v451_v21  ;;  %454 = vst [vmem:[%s2415_s30 + $0x4b0] sm:$0xff] %v453_v22  ;;  %v461_v26 = vld [vmem:[%s2407_s29 + $0x990] sm:$0xff]  ;;  %v463_v27 = vld [vmem:[%s2407_s29 + $0x998] sm:$0xff] }
  0x61   : > { %456 = vst [vmem:[%s2415_s30 + $0x4b8] sm:$0xff] %v455_v23  ;;  %458 = vst [vmem:[%s2415_s30 + $0x4c0] sm:$0xff] %v457_v24  ;;  %v465_v28 = vld [vmem:[%s2407_s29 + $0x9a0] sm:$0xff]  ;;  %v467_v29 = vld [vmem:[%s2407_s29 + $0x9a8] sm:$0xff] }
  0x62   : > { %460 = vst [vmem:[%s2415_s30 + $0x4c8] sm:$0xff] %v459_v25  ;;  %462 = vst [vmem:[%s2415_s30 + $0x4d0] sm:$0xff] %v461_v26  ;;  %v469_v30 = vld [vmem:[%s2407_s29 + $0x9b0] sm:$0xff]  ;;  %v471_v31 = vld [vmem:[%s2407_s29 + $0x9b8] sm:$0xff] }
  0x63   : > { %464 = vst [vmem:[%s2415_s30 + $0x4d8] sm:$0xff] %v463_v27  ;;  %466 = vst [vmem:[%s2415_s30 + $0x4e0] sm:$0xff] %v465_v28 }
  0x64   : > { %468 = vst [vmem:[%s2415_s30 + $0x4e8] sm:$0xff] %v467_v29  ;;  %470 = vst [vmem:[%s2415_s30 + $0x4f0] sm:$0xff] %v469_v30 }
  0x65   : > { %472 = vst [vmem:[%s2415_s30 + $0x4f8] sm:$0xff] %v471_v31 }
  0x66 PF: > { %p2015_p10 = scmp.ge.s32.totalorder %s2330_s15, 1  ;;  %p477_p11 = scmp.lt.s32.totalorder %s2330_s15, 3 }
  0x68   : > { %p478_p12 = pnand %p2015_p10, %p477_p11 }
  0x69   : > { %s2734_s4 = sand.u32 (!%p478_p12), 1, %s2322_s13   ;;  %s2938_s9 = sshll.u32 (!%p478_p12), %s2009_s16, 11 }
  0x6a   : > { %481 = sbr.rel (%p478_p12) target bundleno = 501 (0x1f5), region = 51  ;;  %s672_s10 = sshra.s32 (!%p478_p12), %s2938_s9, 7 }
  0x6b   : > { %s2196_s7 = smul.u32 (!%p478_p12), 1280, %s2734_s4  ;;  %s2946_s19 = scalar_lea.vmem (!%p478_p12), %s3043_s2, %s672_s10 }
  0x6c   : > { %s2016_s16 = sshll.u32 (!%p478_p12), %s2734_s4, 7  ;;  %s2994_s27 = scalar_lea.hbm (!%p478_p12), %s3044_s3, %s2938_s9 }
  0x6d   : > { %s2750_s8 = scalar_lea.vmem (!%p478_p12), [#allocation2], %s2196_s7  ;;  %s2962_s20 = scalar_lea.vmem (!%p478_p12), [#allocation3], %s2016_s16 }
  0x6e   : > { %s1944_s24 = sshll.u32 (!%p478_p12), %s2962_s20, 4  ;;  %s1930_s28 = scalar_lea.sflag (!%p478_p12), [#allocation4], %s2734_s4  ;;  %s2998_s24 = int_to_ptr.vmem [resolvable:$true] %s1944_s24 }
  0x6f   : > { %v2739_v32 = vld [vmem:[%s3041_s0] sm:$0xff]  ;;  %vm1565_vm0 = vcmask 261120   ;;  %v624_v36 = vld [vmem:[%s2750_s8 + $0x388] sm:$0xff]  ;;  %s2270_s29 = scalar_lea.vmem %s2998_s24, 2048  ;;  %s2332_s30 = smov [#allocation3]  }
  0x70   : > { %v2744_v33 = vcombine.high %v2739_v32, %v2739_v32  ;;  %v623_v34 = vld [vmem:[%s2750_s8 + $0x380] sm:$0xff]  ;;  %v632_v38 = vld [vmem:[%s2750_s8 + $0x3c8] sm:$0xff]  ;;  %p2271_p13 = scmp.ne.s32.totalorder %s2998_s24, %s2270_s29  ;;  %s2274_s5 = sshll.u32 %s2332_s30, 4  ;;  %s2275_s5 = int_to_ptr.vmem [resolvable:$false] %s2274_s5 }
  0x71   : > { %v631_v35 = vld [vmem:[%s2750_s8 + $0x3c0] sm:$0xff]  ;;  %v2135_v42 = vcombine.high %v624_v36, %v632_v38  ;;  %v2134_v43 = vcombine.low %v624_v36, %v632_v38  ;;  %v608_v45 = vld [vmem:[%s2750_s8 + $0x308] sm:$0xff]  ;;  %s2276_s6 = scalar_lea.vmem %s2275_s5, 4096  ;;  %p2277_p2 = scmp.lt.s32.totalorder %s2998_s24, %s2275_s5 }
  0x72   : > { %2180 = vmatprep.mubr.msk.bf16.mxu0 %vm1565_vm0, %v2744_v33  ;;  %2181 = vmatprep.mubr.msk.bf16.mxu1 %vm1565_vm0, %v2744_v33  ;;  %v2133_v37 = vcombine.high %v623_v34, %v631_v35  ;;  %v2132_v39 = vcombine.low %v623_v34, %v631_v35  ;;  %v607_v40 = vld [vmem:[%s2750_s8 + $0x300] sm:$0xff]  ;;  %v616_v46 = vld [vmem:[%s2750_s8 + $0x348] sm:$0xff]  ;;  %p2272_p0 = pnand %p2271_p13, %p2391_p6  ;;  %p2278_p3 = scmp.lt.s32.totalorder %s2276_s6, %s2270_s29 }
  0x73   : > { %v615_v41 = vld [vmem:[%s2750_s8 + $0x340] sm:$0xff]  ;;  %v2119_v48 = vcombine.high %v608_v45, %v616_v46  ;;  %v592_v50 = vld [vmem:[%s2750_s8 + $0x288] sm:$0xff]  ;;  %1610 = vmatprep.subr.bf16.mxu1 %v2135_v42  ;;  %v2118_v53 = vcombine.low %v608_v45, %v616_v46 }
  0x74   : > { %v2117_v44 = vcombine.high %v607_v40, %v615_v41  ;;  %v591_v47 = vld [vmem:[%s2750_s8 + $0x280] sm:$0xff]  ;;  %1569 = vmatprep.subr.bf16.mxu0 %v2133_v37  ;;  %v600_v51 = vld [vmem:[%s2750_s8 + $0x2c8] sm:$0xff]  ;;  %v2116_v52 = vcombine.low %v607_v40, %v615_v41  ;;  %1611 = vmatpush1.bf16.msra.mxu1 %v2134_v43  ;;  %p2273_p1 = pneg %p2272_p0  ;;  %p2279_p4 = por %p2278_p3, %p2277_p2 }
  0x75   : > { %v599_v49 = vld [vmem:[%s2750_s8 + $0x2c0] sm:$0xff]  ;;  %1570 = vmatpush1.bf16.msra.mxu0 %v2132_v39  ;;  %1612 = vmatprep.subr.bf16.mxu1 %v2119_v48  ;;  %v2103_v55 = vcombine.high %v592_v50, %v600_v51  ;;  %v576_v58 = vld [vmem:[%s2750_s8 + $0x208] sm:$0xff]  ;;  %v2102_v61 = vcombine.low %v592_v50, %v600_v51  ;;  %v625_v50 = vld [vmem:[%s2750_s8 + $0x390] sm:$0xff] }
  0x76   : > { %1571 = vmatprep.subr.bf16.mxu0 %v2117_v44  ;;  %v2101_v54 = vcombine.high %v591_v47, %v599_v49  ;;  %v575_v56 = vld [vmem:[%s2750_s8 + $0x200] sm:$0xff]  ;;  %v584_v59 = vld [vmem:[%s2750_s8 + $0x248] sm:$0xff]  ;;  %v2100_v60 = vcombine.low %v591_v47, %v599_v49  ;;  %v633_v51 = vld [vmem:[%s2750_s8 + $0x3d0] sm:$0xff]  ;;  %p2280_p5 = pnand %p2279_p4, %p2273_p1 }
  0x77   : > { %v583_v57 = vld [vmem:[%s2750_s8 + $0x240] sm:$0xff]  ;;  %v2087_v63 = vcombine.high %v576_v58, %v584_v59  ;;  %v560_v2 = vld [vmem:[%s2750_s8 + $0x188] sm:$0xff]  ;;  %v2086_v5 = vcombine.low %v576_v58, %v584_v59  ;;  %v609_v58 = vld [vmem:[%s2750_s8 + $0x310] sm:$0xff] }
  0x78   : > { %1613 = vmatpush1.bf16.msra.mxu1 %v2118_v53  ;;  %v2085_v62 = vcombine.high %v575_v56, %v583_v57  ;;  %v559_v0 = vld [vmem:[%s2750_s8 + $0x180] sm:$0xff]  ;;  %v568_v3 = vld [vmem:[%s2750_s8 + $0x1c8] sm:$0xff]  ;;  %v2084_v4 = vcombine.low %v575_v56, %v583_v57  ;;  %v634_v53 = vld [vmem:[%s2750_s8 + $0x3d8] sm:$0xff]  ;;  %v2137_v56 = vcombine.high %v625_v50, %v633_v51 }
  0x79   : > { %1572 = vmatpush1.bf16.msra.mxu0 %v2116_v52  ;;  %1614 = vmatprep.subr.bf16.mxu1 %v2103_v55  ;;  %v567_v1 = vld [vmem:[%s2750_s8 + $0x1c0] sm:$0xff]  ;;  %v2071_v7 = vcombine.high %v560_v2, %v568_v3  ;;  %v544_v10 = vld [vmem:[%s2750_s8 + $0x108] sm:$0xff]  ;;  %v2070_v13 = vcombine.low %v560_v2, %v568_v3  ;;  %v626_v52 = vld [vmem:[%s2750_s8 + $0x398] sm:$0xff] }
  0x7a   : > { %1573 = vmatprep.subr.bf16.mxu0 %v2101_v54  ;;  %v2069_v6 = vcombine.high %v559_v0, %v567_v1  ;;  %v543_v8 = vld [vmem:[%s2750_s8 + $0x100] sm:$0xff]  ;;  %v552_v11 = vld [vmem:[%s2750_s8 + $0x148] sm:$0xff]  ;;  %v2068_v12 = vcombine.low %v559_v0, %v567_v1  ;;  %v2139_v57 = vcombine.high %v626_v52, %v634_v53  ;;  %v617_v59 = vld [vmem:[%s2750_s8 + $0x350] sm:$0xff]  ;;  %v2138_v0 = vcombine.low %v626_v52, %v634_v53 }
  0x7b   : > { %v551_v9 = vld [vmem:[%s2750_s8 + $0x140] sm:$0xff]  ;;  %v2055_v15 = vcombine.high %v544_v10, %v552_v11  ;;  %v528_v18 = vld [vmem:[%s2750_s8 + $0x88] sm:$0xff]  ;;  %v2054_v21 = vcombine.low %v544_v10, %v552_v11  ;;  %v2121_v1 = vcombine.high %v609_v58, %v617_v59  ;;  %v593_v3 = vld [vmem:[%s2750_s8 + $0x290] sm:$0xff] }
  0x7c   : > { %1615 = vmatpush1.bf16.msra.mxu1 %v2102_v61  ;;  %v2053_v14 = vcombine.high %v543_v8, %v551_v9  ;;  %v527_v16 = vld [vmem:[%s2750_s8 + $0x80] sm:$0xff]  ;;  %v536_v19 = vld [vmem:[%s2750_s8 + $0xc8] sm:$0xff]  ;;  %v2052_v20 = vcombine.low %v543_v8, %v551_v9  ;;  %v610_v61 = vld [vmem:[%s2750_s8 + $0x318] sm:$0xff] }
  0x7d   : > { %1574 = vmatpush1.bf16.msra.mxu0 %v2100_v60  ;;  %1616 = vmatprep.subr.bf16.mxu1 %v2087_v63  ;;  %v535_v17 = vld [vmem:[%s2750_s8 + $0xc0] sm:$0xff]  ;;  %v2039_v23 = vcombine.high %v528_v18, %v536_v19  ;;  %v512_v26 = vld [vmem:[%s2750_s8 + $0x8] sm:$0xff]  ;;  %v2038_v29 = vcombine.low %v528_v18, %v536_v19  ;;  %v2800_v60 = vcombine.low %v2739_v32, %v2739_v32  ;;  %v594_v32 = vld [vmem:[%s2750_s8 + $0x298] sm:$0xff] }
  0x7e   : > { %1575 = vmatprep.subr.bf16.mxu0 %v2085_v62  ;;  %v2037_v22 = vcombine.high %v527_v16, %v535_v17  ;;  %v511_v24 = vld [vmem:[%s2750_s8] sm:$0xff]  ;;  %v520_v27 = vld [vmem:[%s2750_s8 + $0x48] sm:$0xff]  ;;  %v2036_v28 = vcombine.low %v527_v16, %v535_v17  ;;  %v618_v62 = vld [vmem:[%s2750_s8 + $0x358] sm:$0xff]  ;;  %v2136_v63 = vcombine.low %v625_v50, %v633_v51 }
  0x7f   : > { %v519_v25 = vld [vmem:[%s2750_s8 + $0x40] sm:$0xff]  ;;  %v2023_v31 = vcombine.high %v512_v26, %v520_v27  ;;  %v656_v36 = vld [vmem:[%s2750_s8 + $0x488] sm:$0xff]  ;;  %v2022_v39 = vcombine.low %v512_v26, %v520_v27  ;;  %v2123_v2 = vcombine.high %v610_v61, %v618_v62  ;;  %v577_v10 = vld [vmem:[%s2750_s8 + $0x210] sm:$0xff] }
  0x80   : > { %1617 = vmatpush1.bf16.msra.mxu1 %v2086_v5  ;;  %v2021_v30 = vcombine.high %v511_v24, %v519_v25  ;;  %v655_v34 = vld [vmem:[%s2750_s8 + $0x480] sm:$0xff]  ;;  %v664_v37 = vld [vmem:[%s2750_s8 + $0x4c8] sm:$0xff]  ;;  %v2020_v38 = vcombine.low %v511_v24, %v519_v25  ;;  %v602_v5 = vld [vmem:[%s2750_s8 + $0x2d8] sm:$0xff] }
  0x81   : > { %1576 = vmatpush1.bf16.msra.mxu0 %v2084_v4  ;;  %1618 = vmatprep.subr.bf16.mxu1 %v2071_v7  ;;  %v663_v35 = vld [vmem:[%s2750_s8 + $0x4c0] sm:$0xff]  ;;  %v2167_v41 = vcombine.high %v656_v36, %v664_v37  ;;  %v640_v44 = vld [vmem:[%s2750_s8 + $0x408] sm:$0xff]  ;;  %v2166_v47 = vcombine.low %v656_v36, %v664_v37  ;;  %v601_v4 = vld [vmem:[%s2750_s8 + $0x2d0] sm:$0xff]  ;;  %v2122_v7 = vcombine.low %v610_v61, %v618_v62 }
  0x82   : > { %1577 = vmatprep.subr.bf16.mxu0 %v2069_v6  ;;  %v2165_v40 = vcombine.high %v655_v34, %v663_v35  ;;  %v639_v42 = vld [vmem:[%s2750_s8 + $0x400] sm:$0xff]  ;;  %v648_v45 = vld [vmem:[%s2750_s8 + $0x448] sm:$0xff]  ;;  %v2164_v46 = vcombine.low %v655_v34, %v663_v35  ;;  %v2120_v6 = vcombine.low %v609_v58, %v617_v59  ;;  %v2105_v8 = vcombine.high %v593_v3, %v601_v4  ;;  %v585_v11 = vld [vmem:[%s2750_s8 + $0x250] sm:$0xff] }
  0x83   : > { %v647_v43 = vld [vmem:[%s2750_s8 + $0x440] sm:$0xff]  ;;  %v2151_v49 = vcombine.high %v640_v44, %v648_v45  ;;  %v2150_v55 = vcombine.low %v640_v44, %v648_v45  ;;  %v2107_v9 = vcombine.high %v594_v32, %v602_v5  ;;  %v2089_v16 = vcombine.high %v577_v10, %v585_v11  ;;  %v561_v18 = vld [vmem:[%s2750_s8 + $0x190] sm:$0xff] }
  0x84   : > { %1619 = vmatpush1.bf16.msra.mxu1 %v2070_v13  ;;  %v2149_v48 = vcombine.high %v639_v42, %v647_v43  ;;  %v2148_v54 = vcombine.low %v639_v42, %v647_v43  ;;  %v586_v13 = vld [vmem:[%s2750_s8 + $0x258] sm:$0xff]  ;;  %v569_v19 = vld [vmem:[%s2750_s8 + $0x1d0] sm:$0xff] }
  0x85   : > { %1578 = vmatpush1.bf16.msra.mxu0 %v2068_v12  ;;  %1620 = vmatprep.subr.bf16.mxu1 %v2055_v15  ;;  %v578_v12 = vld [vmem:[%s2750_s8 + $0x218] sm:$0xff]  ;;  %v2106_v15 = vcombine.low %v594_v32, %v602_v5  ;;  %v2073_v24 = vcombine.high %v561_v18, %v569_v19  ;;  %v545_v26 = vld [vmem:[%s2750_s8 + $0x110] sm:$0xff]  ;;  %v627_v32 = vld [vmem:[%s2750_s8 + $0x3a0] sm:$0xff] }
  0x86   : > { %1579 = vmatprep.subr.bf16.mxu0 %v2053_v14  ;;  %v2104_v14 = vcombine.low %v593_v3, %v601_v4  ;;  %v2091_v17 = vcombine.high %v578_v12, %v586_v13  ;;  %v553_v27 = vld [vmem:[%s2750_s8 + $0x150] sm:$0xff]  ;;  %v635_v5 = vld [vmem:[%s2750_s8 + $0x3e0] sm:$0xff] }
  0x87   : > { %v2057_v34 = vcombine.high %v545_v26, %v553_v27  ;;  %v529_v36 = vld [vmem:[%s2750_s8 + $0x90] sm:$0xff] }
  0x88   : > { %1621 = vmatpush1.bf16.msra.mxu1 %v2054_v21  ;;  %v570_v21 = vld [vmem:[%s2750_s8 + $0x1d8] sm:$0xff]  ;;  %v537_v37 = vld [vmem:[%s2750_s8 + $0xd0] sm:$0xff] }
  0x89   : > { %1580 = vmatpush1.bf16.msra.mxu0 %v2052_v20  ;;  %1622 = vmatprep.subr.bf16.mxu1 %v2039_v23  ;;  %v562_v20 = vld [vmem:[%s2750_s8 + $0x198] sm:$0xff]  ;;  %v2090_v23 = vcombine.low %v578_v12, %v586_v13  ;;  %v2041_v42 = vcombine.high %v529_v36, %v537_v37  ;;  %v513_v44 = vld [vmem:[%s2750_s8 + $0x10] sm:$0xff]  ;;  %v611_v12 = vld [vmem:[%s2750_s8 + $0x320] sm:$0xff] }
  0x8a   : > { %1581 = vmatprep.subr.bf16.mxu0 %v2037_v22  ;;  %v2088_v22 = vcombine.low %v577_v10, %v585_v11  ;;  %v2075_v25 = vcombine.high %v562_v20, %v570_v21  ;;  %v521_v45 = vld [vmem:[%s2750_s8 + $0x50] sm:$0xff]  ;;  %v2141_v10 = vcombine.high %v627_v32, %v635_v5  ;;  %v619_v13 = vld [vmem:[%s2750_s8 + $0x360] sm:$0xff] }
  0x8b   : > { %v2025_v50 = vcombine.high %v513_v44, %v521_v45  ;;  %v657_v52 = vld [vmem:[%s2750_s8 + $0x490] sm:$0xff] }
  0x8c   : > { %1623 = vmatpush1.bf16.msra.mxu1 %v2038_v29  ;;  %v554_v29 = vld [vmem:[%s2750_s8 + $0x158] sm:$0xff]  ;;  %v665_v53 = vld [vmem:[%s2750_s8 + $0x4d0] sm:$0xff] }
  0x8d   : > { %1582 = vmatpush1.bf16.msra.mxu0 %v2036_v28  ;;  %1624 = vmatprep.subr.bf16.mxu1 %v2023_v31  ;;  %v546_v28 = vld [vmem:[%s2750_s8 + $0x118] sm:$0xff]  ;;  %v2074_v31 = vcombine.low %v562_v20, %v570_v21  ;;  %v2169_v58 = vcombine.high %v657_v52, %v665_v53  ;;  %v641_v61 = vld [vmem:[%s2750_s8 + $0x410] sm:$0xff]  ;;  %v595_v20 = vld [vmem:[%s2750_s8 + $0x2a0] sm:$0xff] }
  0x8e   : > { %1583 = vmatprep.subr.bf16.mxu0 %v2021_v30  ;;  %v2072_v30 = vcombine.low %v561_v18, %v569_v19  ;;  %v2059_v35 = vcombine.high %v546_v28, %v554_v29  ;;  %v649_v62 = vld [vmem:[%s2750_s8 + $0x450] sm:$0xff]  ;;  %v2125_v18 = vcombine.high %v611_v12, %v619_v13  ;;  %v603_v21 = vld [vmem:[%s2750_s8 + $0x2e0] sm:$0xff] }
  0x8f   : > { %v2153_v3 = vcombine.high %v641_v61, %v649_v62 }
  0x90   : > { %1625 = vmatpush1.bf16.msra.mxu1 %v2022_v39  ;;  %v538_v39 = vld [vmem:[%s2750_s8 + $0xd8] sm:$0xff] }
  0x91   : > { %1584 = vmatpush1.bf16.msra.mxu0 %v2020_v38  ;;  %1638 = vmatprep.subr.bf16.mxu1 %v2167_v41  ;;  %v530_v38 = vld [vmem:[%s2750_s8 + $0x98] sm:$0xff]  ;;  %v2058_v41 = vcombine.low %v546_v28, %v554_v29  ;;  %v579_v28 = vld [vmem:[%s2750_s8 + $0x220] sm:$0xff] }
  0x92   : > { %1597 = vmatprep.subr.bf16.mxu0 %v2165_v40  ;;  %v2056_v40 = vcombine.low %v545_v26, %v553_v27  ;;  %v2043_v43 = vcombine.high %v530_v38, %v538_v39  ;;  %v2109_v26 = vcombine.high %v595_v20, %v603_v21  ;;  %v587_v29 = vld [vmem:[%s2750_s8 + $0x260] sm:$0xff] }
  0x94   : > { %1639 = vmatpush2.bf16.msra.mxu1 %v2166_v47  ;;  %v522_v47 = vld [vmem:[%s2750_s8 + $0x58] sm:$0xff] }
  0x95   : > { %1598 = vmatpush2.bf16.msra.mxu0 %v2164_v46  ;;  %1640 = vmatprep.subr.bf16.mxu1 %v2151_v49  ;;  %v514_v46 = vld [vmem:[%s2750_s8 + $0x18] sm:$0xff]  ;;  %v2042_v49 = vcombine.low %v530_v38, %v538_v39  ;;  %v563_v38 = vld [vmem:[%s2750_s8 + $0x1a0] sm:$0xff] }
  0x96   : > { %1599 = vmatprep.subr.bf16.mxu0 %v2149_v48  ;;  %v2040_v48 = vcombine.low %v529_v36, %v537_v37  ;;  %v2027_v51 = vcombine.high %v514_v46, %v522_v47  ;;  %v2093_v36 = vcombine.high %v579_v28, %v587_v29  ;;  %v571_v39 = vld [vmem:[%s2750_s8 + $0x1e0] sm:$0xff] }
  0x98   : > { %1641 = vmatpush2.bf16.msra.mxu1 %v2150_v55  ;;  %v666_v55 = vld [vmem:[%s2750_s8 + $0x4d8] sm:$0xff] }
  0x99   : > { %1600 = vmatpush2.bf16.msra.mxu0 %v2148_v54  ;;  %1692 = vmatprep.subr.bf16.mxu1 %v2139_v57  ;;  %v658_v54 = vld [vmem:[%s2750_s8 + $0x498] sm:$0xff]  ;;  %v2026_v57 = vcombine.low %v514_v46, %v522_v47  ;;  %v547_v46 = vld [vmem:[%s2750_s8 + $0x120] sm:$0xff] }
  0x9a   : > { %1651 = vmatprep.subr.bf16.mxu0 %v2137_v56  ;;  %v2024_v56 = vcombine.low %v513_v44, %v521_v45  ;;  %v2171_v59 = vcombine.high %v658_v54, %v666_v55  ;;  %v2077_v44 = vcombine.high %v563_v38, %v571_v39  ;;  %v555_v47 = vld [vmem:[%s2750_s8 + $0x160] sm:$0xff] }
  0x9b   : > { %1643 = vmatmul.mubr.bf16.vlgmr.msra.gmra.mxu1 %v2800_v60 }
  0x9c   : > { %1602 = vmatmul.mubr.bf16.vlgmr.msra.gmra.mxu0 %v2800_v60  ;;  %1693 = vmatpush1.bf16.msra.mxu1 %v2138_v0  ;;  %v650_v0 = vld [vmem:[%s2750_s8 + $0x458] sm:$0xff] }
  0x9d   : > { %1652 = vmatpush1.bf16.msra.mxu0 %v2136_v63  ;;  %1694 = vmatprep.subr.bf16.mxu1 %v2123_v2  ;;  %v642_v63 = vld [vmem:[%s2750_s8 + $0x418] sm:$0xff]  ;;  %v2170_v2 = vcombine.low %v658_v54, %v666_v55  ;;  %v531_v54 = vld [vmem:[%s2750_s8 + $0xa0] sm:$0xff] }
  0x9e   : > { %1653 = vmatprep.subr.bf16.mxu0 %v2121_v1  ;;  %2182 = vmatprep.mubr.msk.bf16.mxu0 %vm1565_vm0, %v2744_v33  ;;  %v2168_v1 = vcombine.low %v657_v52, %v665_v53  ;;  %v2155_v4 = vcombine.high %v642_v63, %v650_v0  ;;  %v2061_v52 = vcombine.high %v547_v46, %v555_v47  ;;  %v539_v55 = vld [vmem:[%s2750_s8 + $0xe0] sm:$0xff] }
  0x9f   : > { %2183 = vmatprep.mubr.msk.bf16.mxu1 %vm1565_vm0, %v2744_v33 }
  0xa0   : > { %1695 = vmatpush1.bf16.msra.mxu1 %v2122_v7  ;;  %v636_v7 = vld [vmem:[%s2750_s8 + $0x3e8] sm:$0xff] }
  0xa1   : > { %1654 = vmatpush1.bf16.msra.mxu0 %v2120_v6  ;;  %1696 = vmatprep.subr.bf16.mxu1 %v2107_v9  ;;  %v628_v6 = vld [vmem:[%s2750_s8 + $0x3a8] sm:$0xff]  ;;  %v2154_v9 = vcombine.low %v642_v63, %v650_v0  ;;  %v515_v63 = vld [vmem:[%s2750_s8 + $0x20] sm:$0xff] }
  0xa2   : > { %1655 = vmatprep.subr.bf16.mxu0 %v2105_v8  ;;  %v2152_v8 = vcombine.low %v641_v61, %v649_v62  ;;  %v2143_v11 = vcombine.high %v628_v6, %v636_v7  ;;  %v2045_v61 = vcombine.high %v531_v54, %v539_v55  ;;  %v523_v0 = vld [vmem:[%s2750_s8 + $0x60] sm:$0xff] }
  0xa4   : > { %1697 = vmatpush1.bf16.msra.mxu1 %v2106_v15  ;;  %v620_v15 = vld [vmem:[%s2750_s8 + $0x368] sm:$0xff] }
  0xa5   : > { %1656 = vmatpush1.bf16.msra.mxu0 %v2104_v14  ;;  %1698 = vmatprep.subr.bf16.mxu1 %v2091_v17  ;;  %v612_v14 = vld [vmem:[%s2750_s8 + $0x328] sm:$0xff]  ;;  %v2142_v17 = vcombine.low %v628_v6, %v636_v7  ;;  %v659_v6 = vld [vmem:[%s2750_s8 + $0x4a0] sm:$0xff] }
  0xa6   : > { %1657 = vmatprep.subr.bf16.mxu0 %v2089_v16  ;;  %v2140_v16 = vcombine.low %v627_v32, %v635_v5  ;;  %v2127_v19 = vcombine.high %v612_v14, %v620_v15  ;;  %v2029_v32 = vcombine.high %v515_v63, %v523_v0  ;;  %v667_v7 = vld [vmem:[%s2750_s8 + $0x4e0] sm:$0xff] }
  0xa8   : > { %1699 = vmatpush1.bf16.msra.mxu1 %v2090_v23  ;;  %v604_v23 = vld [vmem:[%s2750_s8 + $0x2e8] sm:$0xff] }
  0xa9   : > { %1658 = vmatpush1.bf16.msra.mxu0 %v2088_v22  ;;  %1700 = vmatprep.subr.bf16.mxu1 %v2075_v25  ;;  %v596_v22 = vld [vmem:[%s2750_s8 + $0x2a8] sm:$0xff]  ;;  %v2126_v25 = vcombine.low %v612_v14, %v620_v15  ;;  %v643_v14 = vld [vmem:[%s2750_s8 + $0x420] sm:$0xff] }
  0xaa   : > { %1659 = vmatprep.subr.bf16.mxu0 %v2073_v24  ;;  %v2124_v24 = vcombine.low %v611_v12, %v619_v13  ;;  %v2111_v27 = vcombine.high %v596_v22, %v604_v23  ;;  %v2173_v12 = vcombine.high %v659_v6, %v667_v7  ;;  %v651_v15 = vld [vmem:[%s2750_s8 + $0x460] sm:$0xff] }
  0xac   : > { %1701 = vmatpush1.bf16.msra.mxu1 %v2074_v31  ;;  %v588_v31 = vld [vmem:[%s2750_s8 + $0x268] sm:$0xff] }
  0xad   : > { %1660 = vmatpush1.bf16.msra.mxu0 %v2072_v30  ;;  %1702 = vmatprep.subr.bf16.mxu1 %v2059_v35  ;;  %v580_v30 = vld [vmem:[%s2750_s8 + $0x228] sm:$0xff]  ;;  %v2110_v35 = vcombine.low %v596_v22, %v604_v23  ;;  %v629_v22 = vld [vmem:[%s2750_s8 + $0x3b0] sm:$0xff] }
  0xae   : > { %1661 = vmatprep.subr.bf16.mxu0 %v2057_v34  ;;  %v2108_v34 = vcombine.low %v595_v20, %v603_v21  ;;  %v2095_v37 = vcombine.high %v580_v30, %v588_v31  ;;  %v2157_v20 = vcombine.high %v643_v14, %v651_v15  ;;  %v637_v23 = vld [vmem:[%s2750_s8 + $0x3f0] sm:$0xff] }
  0xb0   : > { %1703 = vmatpush1.bf16.msra.mxu1 %v2058_v41  ;;  %v572_v41 = vld [vmem:[%s2750_s8 + $0x1e8] sm:$0xff] }
  0xb1   : > { %1662 = vmatpush1.bf16.msra.mxu0 %v2056_v40  ;;  %1704 = vmatprep.subr.bf16.mxu1 %v2043_v43  ;;  %v564_v40 = vld [vmem:[%s2750_s8 + $0x1a8] sm:$0xff]  ;;  %v2094_v43 = vcombine.low %v580_v30, %v588_v31  ;;  %v613_v30 = vld [vmem:[%s2750_s8 + $0x330] sm:$0xff] }
  0xb2   : > { %1663 = vmatprep.subr.bf16.mxu0 %v2041_v42  ;;  %v2092_v42 = vcombine.low %v579_v28, %v587_v29  ;;  %v2079_v45 = vcombine.high %v564_v40, %v572_v41  ;;  %v2145_v28 = vcombine.high %v629_v22, %v637_v23  ;;  %v621_v31 = vld [vmem:[%s2750_s8 + $0x370] sm:$0xff] }
  0xb4   : > { %1705 = vmatpush1.bf16.msra.mxu1 %v2042_v49  ;;  %v556_v49 = vld [vmem:[%s2750_s8 + $0x168] sm:$0xff] }
  0xb5   : > { %1664 = vmatpush1.bf16.msra.mxu0 %v2040_v48  ;;  %1706 = vmatprep.subr.bf16.mxu1 %v2027_v51  ;;  %v548_v48 = vld [vmem:[%s2750_s8 + $0x128] sm:$0xff]  ;;  %v2078_v51 = vcombine.low %v564_v40, %v572_v41  ;;  %v597_v40 = vld [vmem:[%s2750_s8 + $0x2b0] sm:$0xff] }
  0xb6   : > { %1665 = vmatprep.subr.bf16.mxu0 %v2025_v50  ;;  %v2076_v50 = vcombine.low %v563_v38, %v571_v39  ;;  %v2063_v53 = vcombine.high %v548_v48, %v556_v49  ;;  %v2129_v38 = vcombine.high %v613_v30, %v621_v31  ;;  %v605_v41 = vld [vmem:[%s2750_s8 + $0x2f0] sm:$0xff] }
  0xb8   : > { %1707 = vmatpush1.bf16.msra.mxu1 %v2026_v57  ;;  %v540_v57 = vld [vmem:[%s2750_s8 + $0xe8] sm:$0xff] }
  0xb9   : > { %1666 = vmatpush1.bf16.msra.mxu0 %v2024_v56  ;;  %1720 = vmatprep.subr.bf16.mxu1 %v2171_v59  ;;  %v532_v56 = vld [vmem:[%s2750_s8 + $0xa8] sm:$0xff]  ;;  %v2062_v59 = vcombine.low %v548_v48, %v556_v49  ;;  %v581_v48 = vld [vmem:[%s2750_s8 + $0x230] sm:$0xff] }
  0xba   : > { %1679 = vmatprep.subr.bf16.mxu0 %v2169_v58  ;;  %v2060_v58 = vcombine.low %v547_v46, %v555_v47  ;;  %v2047_v62 = vcombine.high %v532_v56, %v540_v57  ;;  %v2113_v46 = vcombine.high %v597_v40, %v605_v41  ;;  %v589_v49 = vld [vmem:[%s2750_s8 + $0x270] sm:$0xff] }
  0xbc   : > { %1721 = vmatpush2.bf16.msra.mxu1 %v2170_v2  ;;  %v524_v2 = vld [vmem:[%s2750_s8 + $0x68] sm:$0xff] }
  0xbd   : > { %1680 = vmatpush2.bf16.msra.mxu0 %v2168_v1  ;;  %1722 = vmatprep.subr.bf16.mxu1 %v2155_v4  ;;  %v516_v1 = vld [vmem:[%s2750_s8 + $0x28] sm:$0xff]  ;;  %v2046_v4 = vcombine.low %v532_v56, %v540_v57  ;;  %v565_v56 = vld [vmem:[%s2750_s8 + $0x1b0] sm:$0xff] }
  0xbe   : > { %1681 = vmatprep.subr.bf16.mxu0 %v2153_v3  ;;  %v2044_v3 = vcombine.low %v531_v54, %v539_v55  ;;  %v2031_v5 = vcombine.high %v516_v1, %v524_v2  ;;  %v2097_v54 = vcombine.high %v581_v48, %v589_v49  ;;  %v573_v57 = vld [vmem:[%s2750_s8 + $0x1f0] sm:$0xff] }
  0xc0   : > { %1723 = vmatpush2.bf16.msra.mxu1 %v2154_v9  ;;  %v668_v9 = vld [vmem:[%s2750_s8 + $0x4e8] sm:$0xff] }
  0xc1   : > { %1682 = vmatpush2.bf16.msra.mxu0 %v2152_v8  ;;  %1774 = vmatprep.subr.bf16.mxu1 %v2143_v11  ;;  %v660_v8 = vld [vmem:[%s2750_s8 + $0x4a8] sm:$0xff]  ;;  %v2030_v11 = vcombine.low %v516_v1, %v524_v2  ;;  %v557_v1 = vld [vmem:[%s2750_s8 + $0x170] sm:$0xff]  ;;  %v550_v2 = vld [vmem:[%s2750_s8 + $0x138] sm:$0xff] }
  0xc2   : > { %1733 = vmatprep.subr.bf16.mxu0 %v2141_v10  ;;  %v2028_v10 = vcombine.low %v515_v63, %v523_v0  ;;  %v2175_v13 = vcombine.high %v660_v8, %v668_v9  ;;  %v549_v0 = vld [vmem:[%s2750_s8 + $0x130] sm:$0xff] }
  0xc3   : > { %1725 = vmatmul.mubr.bf16.vlgmr.msra.gmra.mxu1 %v2800_v60 }
  0xc4   : > { %1684 = vmatmul.mubr.bf16.vlgmr.msra.gmra.mxu0 %v2800_v60  ;;  %1775 = vmatpush1.bf16.msra.mxu1 %v2142_v17  ;;  %v652_v17 = vld [vmem:[%s2750_s8 + $0x468] sm:$0xff] }
  0xc5   : > { %1734 = vmatpush1.bf16.msra.mxu0 %v2140_v16  ;;  %1776 = vmatprep.subr.bf16.mxu1 %v2127_v19  ;;  %v644_v16 = vld [vmem:[%s2750_s8 + $0x428] sm:$0xff]  ;;  %v2174_v19 = vcombine.low %v660_v8, %v668_v9  ;;  %v541_v8 = vld [vmem:[%s2750_s8 + $0xf0] sm:$0xff]  ;;  %v534_v9 = vld [vmem:[%s2750_s8 + $0xb8] sm:$0xff] }
  0xc6   : > { %1735 = vmatprep.subr.bf16.mxu0 %v2125_v18  ;;  %2184 = vmatprep.mubr.msk.bf16.mxu0 %vm1565_vm0, %v2744_v33  ;;  %v2172_v18 = vcombine.low %v659_v6, %v667_v7  ;;  %v2159_v21 = vcombine.high %v644_v16, %v652_v17  ;;  %v533_v7 = vld [vmem:[%s2750_s8 + $0xb0] sm:$0xff] }
  0xc7   : > { %2185 = vmatprep.mubr.msk.bf16.mxu1 %vm1565_vm0, %v2744_v33 }
  0xc8   : > { %1777 = vmatpush1.bf16.msra.mxu1 %v2126_v25  ;;  %v638_v25 = vld [vmem:[%s2750_s8 + $0x3f8] sm:$0xff] }
  0xc9   : > { %1736 = vmatpush1.bf16.msra.mxu0 %v2124_v24  ;;  %1778 = vmatprep.subr.bf16.mxu1 %v2111_v27  ;;  %v630_v24 = vld [vmem:[%s2750_s8 + $0x3b8] sm:$0xff]  ;;  %v2158_v27 = vcombine.low %v644_v16, %v652_v17  ;;  %v525_v16 = vld [vmem:[%s2750_s8 + $0x70] sm:$0xff] }
  0xca   : > { %1737 = vmatprep.subr.bf16.mxu0 %v2109_v26  ;;  %v2156_v26 = vcombine.low %v643_v14, %v651_v15  ;;  %v2147_v29 = vcombine.high %v630_v24, %v638_v25  ;;  %v517_v15 = vld [vmem:[%s2750_s8 + $0x30] sm:$0xff]  ;;  %v518_v17 = vld [vmem:[%s2750_s8 + $0x38] sm:$0xff] }
  0xcc   : > { %1779 = vmatpush1.bf16.msra.mxu1 %v2110_v35  ;;  %v622_v35 = vld [vmem:[%s2750_s8 + $0x378] sm:$0xff] }
  0xcd   : > { %1738 = vmatpush1.bf16.msra.mxu0 %v2108_v34  ;;  %1780 = vmatprep.subr.bf16.mxu1 %v2095_v37  ;;  %v614_v34 = vld [vmem:[%s2750_s8 + $0x338] sm:$0xff]  ;;  %v2146_v37 = vcombine.low %v630_v24, %v638_v25  ;;  %v669_v24 = vld [vmem:[%s2750_s8 + $0x4f0] sm:$0xff] }
  0xce   : > { %1739 = vmatprep.subr.bf16.mxu0 %v2093_v36  ;;  %v2144_v36 = vcombine.low %v629_v22, %v637_v23  ;;  %v2131_v39 = vcombine.high %v614_v34, %v622_v35  ;;  %v661_v23 = vld [vmem:[%s2750_s8 + $0x4b0] sm:$0xff]  ;;  %v662_v25 = vld [vmem:[%s2750_s8 + $0x4b8] sm:$0xff] }
  0xd0   : > { %1781 = vmatpush1.bf16.msra.mxu1 %v2094_v43  ;;  %v606_v43 = vld [vmem:[%s2750_s8 + $0x2f8] sm:$0xff] }
  0xd1   : > { %1740 = vmatpush1.bf16.msra.mxu0 %v2092_v42  ;;  %1782 = vmatprep.subr.bf16.mxu1 %v2079_v45  ;;  %v598_v42 = vld [vmem:[%s2750_s8 + $0x2b8] sm:$0xff]  ;;  %v2130_v45 = vcombine.low %v614_v34, %v622_v35  ;;  %v653_v34 = vld [vmem:[%s2750_s8 + $0x470] sm:$0xff] }
  0xd2   : > { %1741 = vmatprep.subr.bf16.mxu0 %v2077_v44  ;;  %v2128_v44 = vcombine.low %v613_v30, %v621_v31  ;;  %v2115_v47 = vcombine.high %v598_v42, %v606_v43  ;;  %v645_v31 = vld [vmem:[%s2750_s8 + $0x430] sm:$0xff]  ;;  %v646_v35 = vld [vmem:[%s2750_s8 + $0x438] sm:$0xff] }
  0xd4   : > { %1783 = vmatpush1.bf16.msra.mxu1 %v2078_v51  ;;  %v590_v51 = vld [vmem:[%s2750_s8 + $0x278] sm:$0xff] }
  0xd5   : > { %1742 = vmatpush1.bf16.msra.mxu0 %v2076_v50  ;;  %1784 = vmatprep.subr.bf16.mxu1 %v2063_v53  ;;  %v582_v50 = vld [vmem:[%s2750_s8 + $0x238] sm:$0xff]  ;;  %v2114_v53 = vcombine.low %v598_v42, %v606_v43  ;;  %v679_v43 = vlaneseq }
  0xd6   : > { %1743 = vmatprep.subr.bf16.mxu0 %v2061_v52  ;;  %v2112_v52 = vcombine.low %v597_v40, %v605_v41  ;;  %v2099_v55 = vcombine.high %v582_v50, %v590_v51  ;;  %v2160_v41 = vcombine.low %v645_v31, %v653_v34 }
  0xd8   : > { %1785 = vmatpush1.bf16.msra.mxu1 %v2062_v59  ;;  %v574_v59 = vld [vmem:[%s2750_s8 + $0x1f8] sm:$0xff] }
  0xd9   : > { %1744 = vmatpush1.bf16.msra.mxu0 %v2060_v58  ;;  %1786 = vmatprep.subr.bf16.mxu1 %v2047_v62  ;;  %v566_v58 = vld [vmem:[%s2750_s8 + $0x1b8] sm:$0xff]  ;;  %v2081_v62 = vcombine.high %v565_v56, %v573_v57 }
  0xda   : > { %1745 = vmatprep.subr.bf16.mxu0 %v2045_v61  ;;  %v2096_v61 = vcombine.low %v581_v48, %v589_v49  ;;  %v2083_v63 = vcombine.high %v566_v58, %v574_v59 }
  0xdc   : > { %1787 = vmatpush1.bf16.msra.mxu1 %v2046_v4  ;;  %v2080_v4 = vcombine.low %v565_v56, %v573_v57 }
  0xdd   : > { %1746 = vmatpush1.bf16.msra.mxu0 %v2044_v3  ;;  %1788 = vmatprep.subr.bf16.mxu1 %v2031_v5  ;;  %v558_v3 = vld [vmem:[%s2750_s8 + $0x178] sm:$0xff]  ;;  %v2065_v5 = vcombine.high %v549_v0, %v557_v1 }
  0xde   : > { %1747 = vmatprep.subr.bf16.mxu0 %v2029_v32  ;;  %v2082_v32 = vcombine.low %v566_v58, %v574_v59  ;;  %v2067_v6 = vcombine.high %v550_v2, %v558_v3 }
  0xe0   : > { %1789 = vmatpush1.bf16.msra.mxu1 %v2030_v11  ;;  %v2064_v11 = vcombine.low %v549_v0, %v557_v1 }
  0xe1   : > { %1748 = vmatpush1.bf16.msra.mxu0 %v2028_v10  ;;  %1802 = vmatprep.subr.bf16.mxu1 %v2175_v13  ;;  %v542_v10 = vld [vmem:[%s2750_s8 + $0xf8] sm:$0xff]  ;;  %v2049_v13 = vcombine.high %v533_v7, %v541_v8 }
  0xe2   : > { %1761 = vmatprep.subr.bf16.mxu0 %v2173_v12  ;;  %v2066_v12 = vcombine.low %v550_v2, %v558_v3  ;;  %v2051_v14 = vcombine.high %v534_v9, %v542_v10 }
  0xe4   : > { %1803 = vmatpush2.bf16.msra.mxu1 %v2174_v19  ;;  %v2048_v19 = vcombine.low %v533_v7, %v541_v8 }
  0xe5   : > { %1762 = vmatpush2.bf16.msra.mxu0 %v2172_v18  ;;  %1804 = vmatprep.subr.bf16.mxu1 %v2159_v21  ;;  %v526_v18 = vld [vmem:[%s2750_s8 + $0x78] sm:$0xff]  ;;  %v2033_v21 = vcombine.high %v517_v15, %v525_v16 }
  0xe6   : > { %1763 = vmatprep.subr.bf16.mxu0 %v2157_v20  ;;  %v2050_v20 = vcombine.low %v534_v9, %v542_v10  ;;  %v2035_v22 = vcombine.high %v518_v17, %v526_v18 }
  0xe8   : > { %1805 = vmatpush2.bf16.msra.mxu1 %v2158_v27  ;;  %v2032_v27 = vcombine.low %v517_v15, %v525_v16 }
  0xe9   : > { %1764 = vmatpush2.bf16.msra.mxu0 %v2156_v26  ;;  %1856 = vmatprep.subr.bf16.mxu1 %v2147_v29  ;;  %v670_v26 = vld [vmem:[%s2750_s8 + $0x4f8] sm:$0xff]  ;;  %v2177_v29 = vcombine.high %v661_v23, %v669_v24 }
  0xea   : > { %1815 = vmatprep.subr.bf16.mxu0 %v2145_v28  ;;  %v2034_v28 = vcombine.low %v518_v17, %v526_v18  ;;  %v2179_v30 = vcombine.high %v662_v25, %v670_v26 }
  0xeb   : > { %1807 = vmatmul.mubr.bf16.vlgmr.msra.gmra.mxu1 %v2800_v60 }
  0xec   : > { %1766 = vmatmul.mubr.bf16.vlgmr.msra.gmra.mxu0 %v2800_v60  ;;  %1857 = vmatpush1.bf16.msra.mxu1 %v2146_v37  ;;  %v2176_v37 = vcombine.low %v661_v23, %v669_v24 }
  0xed   : > { %1816 = vmatpush1.bf16.msra.mxu0 %v2144_v36  ;;  %1858 = vmatprep.subr.bf16.mxu1 %v2131_v39  ;;  %v654_v36 = vld [vmem:[%s2750_s8 + $0x478] sm:$0xff]  ;;  %v2161_v39 = vcombine.high %v645_v31, %v653_v34 }
  0xee   : > { %1817 = vmatprep.subr.bf16.mxu0 %v2129_v38  ;;  %2186 = vmatprep.mubr.msk.bf16.mxu0 %vm1565_vm0, %v2744_v33  ;;  %v2178_v38 = vcombine.low %v662_v25, %v670_v26  ;;  %v2163_v40 = vcombine.high %v646_v35, %v654_v36  ;;  %v2162_v42 = vcombine.low %v646_v35, %v654_v36 }
  0xef   : > { %2187 = vmatprep.mubr.msk.bf16.mxu1 %vm1565_vm0, %v2744_v33  ;;  %v2098_v33 = vcombine.low %v582_v50, %v590_v51 }
  0xf0   : > { %1859 = vmatpush1.bf16.msra.mxu1 %v2130_v45 }
  0xf1   : > { %1818 = vmatpush1.bf16.msra.mxu0 %v2128_v44  ;;  %1860 = vmatprep.subr.bf16.mxu1 %v2115_v47  ;;  %v2941_v44 = vshrl.u32 %v679_v43, 7 }
  0xf2   : > { %1819 = vmatprep.subr.bf16.mxu0 %v2113_v46  ;;  %v675_v46 = vld [vmem:[%s2946_s19] sm:$0xff] }
  0xf3   : > { %v681_v45 = vsub.s32 0, %v2941_v44  ;;  %v689_v47 = vsub.s32 2, %v2941_v44  ;;  %v693_v48 = vsub.s32 3, %v2941_v44  ;;  %v709_v7 = vsub.s32 7, %v2941_v44 }
  0xf4   : > { %1861 = vmatpush1.bf16.msra.mxu1 %v2114_v53 }
  0xf5   : > { %1820 = vmatpush1.bf16.msra.mxu0 %v2112_v52  ;;  %1862 = vmatprep.subr.bf16.mxu1 %v2099_v55  ;;  %v682_v49 = vrot.slane %v675_v46, %v681_v45  ;;  %v690_v50 = vrot.slane %v675_v46, %v689_v47  ;;  %v694_v53 = vrot.slane %v675_v46, %v693_v48 }
  0xf6   : > { %1821 = vmatprep.subr.bf16.mxu0 %v2097_v54 }
  0xf8   : > { %1863 = vmatpush1.bf16.msra.mxu1 %v2098_v33 }
  0xf9   : > { %1822 = vmatpush1.bf16.msra.mxu0 %v2096_v61  ;;  %1864 = vmatprep.subr.bf16.mxu1 %v2083_v63 }
  0xfa   : > { %1823 = vmatprep.subr.bf16.mxu0 %v2081_v62 }
  0xfc   : > { %1865 = vmatpush1.bf16.msra.mxu1 %v2082_v32  ;;  %v697_v32 = vsub.s32 4, %v2941_v44 }
  0xfd   : > { %1824 = vmatpush1.bf16.msra.mxu0 %v2080_v4  ;;  %1866 = vmatprep.subr.bf16.mxu1 %v2067_v6  ;;  %v701_v6 = vsub.s32 5, %v2941_v44 }
  0xfe   : > { %1825 = vmatprep.subr.bf16.mxu0 %v2065_v5  ;;  %v705_v5 = vsub.s32 6, %v2941_v44  ;;  %v698_v8 = vrot.slane %v675_v46, %v697_v32 }
  0xff   : > { %v702_v10 = vrot.slane %v675_v46, %v701_v6 }
 0x100   : > { %1867 = vmatpush1.bf16.msra.mxu1 %v2066_v12  ;;  %v706_v9 = vrot.slane %v675_v46, %v705_v5  ;;  %v710_v12 = vrot.slane %v675_v46, %v709_v7 }
 0x101   : > { %1826 = vmatpush1.bf16.msra.mxu0 %v2064_v11  ;;  %1868 = vmatprep.subr.bf16.mxu1 %v2051_v14 }
 0x102   : > { %1827 = vmatprep.subr.bf16.mxu0 %v2049_v13 }
 0x104   : > { %1869 = vmatpush1.bf16.msra.mxu1 %v2050_v20 }
 0x105   : > { %1828 = vmatpush1.bf16.msra.mxu0 %v2048_v19  ;;  %1870 = vmatprep.subr.bf16.mxu1 %v2035_v22 }
 0x106   : > { %1829 = vmatprep.subr.bf16.mxu0 %v2033_v21 }
 0x108   : > { %1871 = vmatpush1.bf16.msra.mxu1 %v2034_v28  ;;  %v676_v28 = vld [vmem:[%s2946_s19 + $0x8] sm:$0xff] }
 0x109   : > { %1830 = vmatpush1.bf16.msra.mxu0 %v2032_v27  ;;  %1884 = vmatprep.subr.bf16.mxu1 %v2179_v30  ;;  %v722_v30 = vrot.slane %v676_v28, %v689_v47  ;;  %v726_v35 = vrot.slane %v676_v28, %v693_v48 }
 0x10a   : > { %1843 = vmatprep.subr.bf16.mxu0 %v2177_v29  ;;  %v714_v29 = vrot.slane %v676_v28, %v681_v45 }
 0x10c   : > { %1885 = vmatpush2.bf16.msra.mxu1 %v2178_v38 }
 0x10d   : > { %1844 = vmatpush2.bf16.msra.mxu0 %v2176_v37  ;;  %1886 = vmatprep.subr.bf16.mxu1 %v2163_v40 }
 0x10e   : > { %1845 = vmatprep.subr.bf16.mxu0 %v2161_v39 }
 0x110   : > { %1887 = vmatpush2.bf16.msra.mxu1 %v2162_v42 }
 0x111   : > { %1846 = vmatpush2.bf16.msra.mxu0 %v2160_v41 }
 0x113   : > { %1889 = vmatmul.mubr.bf16.vlgmr.msra.gmra.mxu1 %v2800_v60 }
 0x114   : > { %1848 = vmatmul.mubr.bf16.vlgmr.msra.gmra.mxu0 %v2800_v60  ;;  %v685_v60 = vsub.s32 1, %v2941_v44 }
 0x116   : > { %v686_v51 = vrot.slane %v675_v46, %v685_v60  ;;  %v718_v31 = vrot.slane %v676_v28, %v685_v60 }
 0x15b   : > { %v1644_v55 = vpop.f32.mrf.mxu1 }
 0x15c   : > { %v1603_v52 = vpop.f32.mrf.mxu0  ;;  %v1645_v56 = vadd.f32 %v1644_v55, %v690_v50  ;;  %v730_v50 = vrot.slane %v676_v28, %v697_v32 }
 0x15d   : > { %v1604_v54 = vadd.f32 %v1603_v52, %v682_v49  ;;  %v1646_v59 = vpop.f32.mrf.mxu1  ;;  %v734_v52 = vrot.slane %v676_v28, %v701_v6 }
 0x15e   : > { %v1605_v57 = vpop.f32.mrf.mxu0  ;;  %v1647_v61 = vadd.f32 %v1646_v59, %v694_v53 }
 0x15f   : > { %2238 = vtanh.f32 %v1604_v54  ;;  %v1606_v58 = vadd.f32 %v1605_v57, %v686_v51  ;;  %v1648_v62 = vpop.f32.mrf.mxu1  ;;  %v738_v51 = vrot.slane %v676_v28, %v705_v5  ;;  %v742_v54 = vrot.slane %v676_v28, %v709_v7 }
 0x160   : > { %2240 = vtanh.f32 %v1645_v56  ;;  %v1607_v33 = vpop.f32.mrf.mxu0 }
 0x161   : > { %2242 = vtanh.f32 %v1606_v58  ;;  %v1649_v0 = vpop.f32.mrf.mxu1 }
 0x162   : > { %2244 = vtanh.f32 %v1647_v61  ;;  %v1608_v63 = vpop.f32.mrf.mxu0 }
 0x16c   : > { %v2239_v1 = vpop.eup %2238 }
 0x16d   : > { %v2241_v2 = vpop.eup %2240  ;;  %1913 = vst [vmem:[%s2962_s20] sm:$0xff] %v2239_v1 }
 0x16e   : > { %v2243_v3 = vpop.eup %2242  ;;  %1915 = vst [vmem:[%s2962_s20 + $0x10] sm:$0xff] %v2241_v2 }
 0x16f   : > { %v2245_v4 = vpop.eup %2244  ;;  %1914 = vst [vmem:[%s2962_s20 + $0x8] sm:$0xff] %v2243_v3 }
 0x170   : > { %1916 = vst [vmem:[%s2962_s20 + $0x18] sm:$0xff] %v2245_v4 }
 0x183   : > { %v1726_v14 = vpop.f32.mrf.mxu1 }
 0x184   : > { %v1685_v11 = vpop.f32.mrf.mxu0  ;;  %v1727_v15 = vadd.f32 %v1726_v14, %v706_v9 }
 0x185   : > { %v1686_v13 = vadd.f32 %v1685_v11, %v698_v8  ;;  %v1728_v18 = vpop.f32.mrf.mxu1 }
 0x186   : > { %v1687_v16 = vpop.f32.mrf.mxu0  ;;  %v1729_v19 = vadd.f32 %v1728_v18, %v710_v12 }
 0x187   : > { %2246 = vtanh.f32 %v1686_v13  ;;  %v1688_v17 = vadd.f32 %v1687_v16, %v702_v10  ;;  %v1730_v21 = vpop.f32.mrf.mxu1 }
 0x188   : > { %2248 = vtanh.f32 %v1727_v15  ;;  %v1689_v20 = vpop.f32.mrf.mxu0 }
 0x189   : > { %2250 = vtanh.f32 %v1688_v17  ;;  %v1731_v23 = vpop.f32.mrf.mxu1 }
 0x18a   : > { %2252 = vtanh.f32 %v1729_v19  ;;  %v1690_v22 = vpop.f32.mrf.mxu0 }
 0x194   : > { %v2247_v24 = vpop.eup %2246 }
 0x195   : > { %v2249_v25 = vpop.eup %2248  ;;  %1917 = vst [vmem:[%s2962_s20 + $0x20] sm:$0xff] %v2247_v24 }
 0x196   : > { %v2251_v26 = vpop.eup %2250  ;;  %1919 = vst [vmem:[%s2962_s20 + $0x30] sm:$0xff] %v2249_v25 }
 0x197   : > { %v2253_v27 = vpop.eup %2252  ;;  %1918 = vst [vmem:[%s2962_s20 + $0x28] sm:$0xff] %v2251_v26 }
 0x198   : > { %1920 = vst [vmem:[%s2962_s20 + $0x38] sm:$0xff] %v2253_v27 }
 0x1ab   : > { %v1808_v37 = vpop.f32.mrf.mxu1 }
 0x1ac   : > { %v1767_v34 = vpop.f32.mrf.mxu0  ;;  %v1809_v38 = vadd.f32 %v1808_v37, %v722_v30 }
 0x1ad   : > { %v1768_v36 = vadd.f32 %v1767_v34, %v714_v29  ;;  %v1810_v41 = vpop.f32.mrf.mxu1 }
 0x1ae   : > { %v1769_v39 = vpop.f32.mrf.mxu0  ;;  %v1811_v42 = vadd.f32 %v1810_v41, %v726_v35 }
 0x1af   : > { %2254 = vtanh.f32 %v1768_v36  ;;  %v1770_v40 = vadd.f32 %v1769_v39, %v718_v31  ;;  %v1812_v45 = vpop.f32.mrf.mxu1 }
 0x1b0   : > { %2256 = vtanh.f32 %v1809_v38  ;;  %v1771_v43 = vpop.f32.mrf.mxu0 }
 0x1b1   : > { %2258 = vtanh.f32 %v1770_v40  ;;  %v1813_v44 = vpop.f32.mrf.mxu1 }
 0x1b2   : > { %2260 = vtanh.f32 %v1811_v42  ;;  %v1772_v46 = vpop.f32.mrf.mxu0 }
 0x1bc   : > { %v2255_v47 = vpop.eup %2254 }
 0x1bd   : > { %v2257_v60 = vpop.eup %2256  ;;  %1921 = vst [vmem:[%s2962_s20 + $0x40] sm:$0xff] %v2255_v47 }
 0x1be   : > { %v2259_v48 = vpop.eup %2258  ;;  %1923 = vst [vmem:[%s2962_s20 + $0x50] sm:$0xff] %v2257_v60 }
 0x1bf   : > { %v2261_v49 = vpop.eup %2260  ;;  %1922 = vst [vmem:[%s2962_s20 + $0x48] sm:$0xff] %v2259_v48 }
 0x1c0   : > { %1924 = vst [vmem:[%s2962_s20 + $0x58] sm:$0xff] %v2261_v49 }
 0x1d3   : > { %v1890_v56 = vpop.f32.mrf.mxu1 }
 0x1d4   : > { %v1849_v53 = vpop.f32.mrf.mxu0  ;;  %v1891_v57 = vadd.f32 %v1890_v56, %v738_v51 }
 0x1d5   : > { %v1850_v55 = vadd.f32 %v1849_v53, %v730_v50  ;;  %v1892_v61 = vpop.f32.mrf.mxu1 }
 0x1d6   : > { %v1851_v58 = vpop.f32.mrf.mxu0  ;;  %v1893_v33 = vadd.f32 %v1892_v61, %v742_v54 }
 0x1d7   : > { %2262 = vtanh.f32 %v1850_v55  ;;  %v1852_v59 = vadd.f32 %v1851_v58, %v734_v52  ;;  %v1894_v63 = vpop.f32.mrf.mxu1 }
 0x1d8   : > { %2264 = vtanh.f32 %v1891_v57  ;;  %v1853_v62 = vpop.f32.mrf.mxu0 }
 0x1d9   : > { %2266 = vtanh.f32 %v1852_v59  ;;  %v1895_v1 = vpop.f32.mrf.mxu1 }
 0x1da   : > { %2268 = vtanh.f32 %v1893_v33  ;;  %v1854_v0 = vpop.f32.mrf.mxu0 }
 0x1e4   : > { %v2263_v2 = vpop.eup %2262 }
 0x1e5   : > { %v2265_v3 = vpop.eup %2264  ;;  %1925 = vst [vmem:[%s2962_s20 + $0x60] sm:$0xff] %v2263_v2 }
 0x1e6   : > { %v2267_v4 = vpop.eup %2266  ;;  %1927 = vst [vmem:[%s2962_s20 + $0x70] sm:$0xff] %v2265_v3 }
 0x1e7   : > { %v2269_v32 = vpop.eup %2268  ;;  %1926 = vst [vmem:[%s2962_s20 + $0x68] sm:$0xff] %v2267_v4 }
 0x1e8   : > { %1928 = vst [vmem:[%s2962_s20 + $0x78] sm:$0xff] %v2269_v32 }
 0x1e9   : > { %2283 = shalt.err (!%p2280_p5)
}
 0x1ea   : > { %s2284_s7 = scalar_lea.hbm %s2994_s27, 2048  ;;  %s2288_s9 = scalar_lea.hbm %s3044_s3, 4096 }
 0x1eb   : > { %p2285_p7 = scmp.ne.s32.totalorder %s2994_s27, %s2284_s7  ;;  %p2289_p12 = scmp.lt.s32.totalorder %s2994_s27, %s3044_s3 }
 0x1ec   : > { %p2290_p13 = scmp.lt.s32.totalorder %s2288_s9, %s2284_s7 }
 0x1ed   : > { %p2286_p10 = pnand %p2285_p7, %p2391_p6 }
 0x1ee   : > { %p2291_p0 = por %p2290_p13, %p2289_p12 }
 0x1ef   : > { %p2287_p11 = pneg %p2286_p10 }
 0x1f1   : > { %p2292_p1 = pnand %p2291_p0, %p2287_p11 }
 0x1f3   : > { %2295 = shalt.err (!%p2292_p1)
}
 0x1f4   : > { %2197 = dma.vmem_to_hbm [thread:$0]  (%p2391_p6), %s2998_s24, 2048, %s2994_s27, %s1930_s28  }
 0x1f5 PF: > { %s1956_s17 = sand.u32 1, %s2318_s12   ;;  %p2200_p2 = pnand %p2012_p9, %p2395_p8 }
 0x1f6   : > { %s1957_s19 = scalar_lea.sflag [#allocation4], %s1956_s17 }
 0x1f7   : > { %p2201_p3 = pneg %p2200_p2 }
 0x1f9   : > { %2313 = dma.done.wait (%p2201_p3), %s1957_s19, 2048  }
 0x1fa   : > { %2315 = vsyncadd (%p2201_p3), %s1957_s19, 4294965248  ;;  %p13_p4 = scmp.ge.s32.totalorder %s2376_s18, 4   ;;  %s3047_s12 = smov %s2322_s13 }
 0x1fb   : > { %s3048_s13 = smov %s2326_s14  ;;  %s3049_s14 = smov %s2389_s21 }
 0x1fc   : > { %s3050_s15 = smov %s2376_s18  ;;  %15 = sbr.rel (!%p13_p4) target bundleno = 3 (0x3), region = 96 }
 0x201   :  { %1962 = vsyncpa [#allocation4], 1 }
 0x202   :  { %1964 = vsyncpa [#allocation4 + $0x1], 1 }

</bundles_post_ra>
